<compile_context>
chip_gen: v6e
topology: v6e:2x2x1
jax: 0.10.0
libtpu: 0.0.40
codegen_flags: <defaults>
</compile_context>

<pallas_src>
import functools

import numpy as np
import jax
import jax.numpy as jnp
from jax.experimental import pallas as pl
from jax.experimental.pallas import tpu as pltpu


def _round_up(x, m):
    return ((x + m - 1) // m) * m


def _conv_layer_geometry(H, W, Cin, Cout):
    """Geometry of one k=3, stride=2, pad=1 conv layer (NHWC)."""
    Ho = (H - 1) // 2 + 1
    Wo = (W - 1) // 2 + 1
    Wop = _round_up(Wo, 8)      # pad output cols to a sublane tile so every
                                # in-kernel reshape is tile-aligned
    Hp = 2 * Ho + 2             # zero-padded rows held in the VMEM scratch
    Wp = 2 * Wop + 2            # zero-padded cols (extra slack stays zero)
    return dict(H=H, W=W, Cin=Cin, Cout=Cout, Ho=Ho, Wo=Wo, Wop=Wop, Hp=Hp, Wp=Wp)


# ----------------------------------------------------------------------------
# Fused encoder kernel (one batch element per grid step)
# ----------------------------------------------------------------------------
def _build_encoder_kernel(layers, n_out_pad):
    n_conv = len(layers)

    def kernel(*refs):
        x_ref = refs[0]
        conv_refs = refs[1:1 + 2 * n_conv]          # (w, b) per conv layer
        wh_ref = refs[1 + 2 * n_conv]
        bh_ref = refs[2 + 2 * n_conv]
        out_ref = refs[3 + 2 * n_conv]
        pbufs = refs[4 + 2 * n_conv:]                # per-layer padded scratch

        h = x_ref[...].astype(jnp.float32)           # (1, H, W, Cin) NHWC
        for l, g in enumerate(layers):
            w_ref = conv_refs[2 * l]
            b_ref = conv_refs[2 * l + 1]
            pbuf = pbufs[l]
            H, W, Cin, Cout = g["H"], g["W"], g["Cin"], g["Cout"]
            Ho, Wo, Wop = g["Ho"], g["Wo"], g["Wop"]

            # Zero-padded activation, resident in VMEM.
            pbuf[...] = jnp.zeros(pbuf.shape, jnp.float32)
            pbuf[:, 1:H + 1, 1:W + 1, :] = h

            # im2col taps built in VMEM:
            #   columns: stride-2 load along the sublane (W) axis of the ref,
            #   rows:    stride-2 phase split along the major H axis (reshape).
            tap = {}
            for j in range(3):
                colj = pbuf[:, :, pl.ds(j, Wop, stride=2), :]   # (1, Hp, Wop, Cin)
                for i in range(3):
                    a = 0 if i < 2 else 2
                    p = 1 if i == 1 else 0
                    r = colj[:, a:a + 2 * Ho, :, :].reshape(1, Ho, 2, Wop, Cin)
                    tap[(i, j)] = r[:, :, p, :, :]              # (1, Ho, Wop, Cin)

            # Column order (kh, kw, ci) matches the pre-laid-out weight rows.
            a4 = jnp.concatenate(
                [tap[(i, j)] for i in range(3) for j in range(3)],
                axis=-1)                                        # (1, Ho, Wop, 9*Cin)
            a2 = a4.reshape(Ho * Wop, 9 * Cin)                  # tile-aligned collapse
            o2 = jnp.dot(a2, w_ref[...], preferred_element_type=jnp.float32)
            o2 = jnp.maximum(o2 + b_ref[...], 0.0)              # bias + ReLU
            # drop the Wo->Wop padding columns (their inputs were zeros)
            h = o2.reshape(1, Ho, Wop, Cout)[:, :, :Wo, :]      # (1, Ho, Wo, Cout)

        # Flatten in NHWC (h, w, c) order - the NCHW flatten permutation was
        # folded into the head weights at init - then one fused heads matmul.
        g = layers[-1]
        enc = jnp.concatenate(
            [h[:, hh, ww, :] for hh in range(g["Ho"]) for ww in range(g["Wo"])],
            axis=-1)                                            # (1, flat_shape)
        heads = jnp.dot(enc, wh_ref[...], preferred_element_type=jnp.float32)
        heads = heads + bh_ref[...]
        out_ref[...] = heads.reshape(out_ref.shape)

    return kernel


# ----------------------------------------------------------------------------
# Forward pass
# ----------------------------------------------------------------------------
def encoder_forward(params, x, *, latent_dims, pose_dims):
    """x: (B, 1, H, W) PyTorch NCHW. Returns (mu, log_var, pose)."""
    xh = jnp.transpose(x, (0, 2, 3, 1)).astype(jnp.float32)     # NHWC once
    B, H, W, Cin = xh.shape

    layers = []
    for (w2d, b2) in params["convs"]:
        Cout = w2d.shape[1]
        g = _conv_layer_geometry(H, W, Cin, Cout)
        layers.append(g)
        H, W, Cin = g["Ho"], g["Wo"], Cout

    n_out_pad = params["heads_w"].shape[1]
    n_out = 2 * latent_dims + pose_dims

    kernel = _build_encoder_kernel(layers, n_out_pad)

    in_specs = [pl.BlockSpec((1, xh.shape[1], xh.shape[2], xh.shape[3]),
                             lambda b: (b, 0, 0, 0))]
    inputs = [xh]
    for (w2d, b2) in params["convs"]:
        in_specs.append(pl.BlockSpec(w2d.shape, lambda b: (0, 0)))
        in_specs.append(pl.BlockSpec(b2.shape, lambda b: (0, 0)))
        inputs += [w2d, b2]
    in_specs.append(pl.BlockSpec(params["heads_w"].shape, lambda b: (0, 0)))
    in_specs.append(pl.BlockSpec(params["heads_b"].shape, lambda b: (0, 0)))
    inputs += [params["heads_w"], params["heads_b"]]

    scratch_shapes = [pltpu.VMEM((1, g["Hp"], g["Wp"], g["Cin"]), jnp.float32)
                      for g in layers]

    out = pl.pallas_call(
        kernel,
        out_shape=jax.ShapeDtypeStruct((B, 1, n_out_pad), jnp.float32),
        grid=(B,),
        in_specs=in_specs,
        out_specs=pl.BlockSpec((1, 1, n_out_pad), lambda b: (b, 0, 0)),
        scratch_shapes=scratch_shapes,
        compiler_params=pltpu.CompilerParams(
            dimension_semantics=("parallel",),
            vmem_limit_bytes=32 * 1024 * 1024),
    )(*inputs)

    heads = out[:, 0, :n_out]
    mu = heads[:, :latent_dims]
    log_var = heads[:, latent_dims:2 * latent_dims]
    pose = heads[:, 2 * latent_dims:2 * latent_dims + pose_dims]
    return mu, log_var, pose


# ----------------------------------------------------------------------------
# Parameters: PyTorch-layout init + one-time layout preparation for the kernel
# ----------------------------------------------------------------------------
def init_encoder_params_torch(key, filters, latent_dims, pose_dims, flat_shape):
    keys = iter(jax.random.split(key, 4 * len(filters) + 8))

    def uinit(shape, fan_in):
        bound = 1.0 / np.sqrt(fan_in)
        return jax.random.uniform(next(keys), shape, jnp.float32, -bound, bound)

    convs = []
    in_ch = 1
    for f in filters:
        fan_in = in_ch * 9
        convs.append((uinit((f, in_ch, 3, 3), fan_in), uinit((f,), fan_in)))
        in_ch = f
    return {
        "convs": convs,                                    # (Cout, Cin, 3, 3), (Cout,)
        "w_mu": uinit((latent_dims, flat_shape), flat_shape),
        "b_mu": uinit((latent_dims,), flat_shape),
        "w_lv": uinit((latent_dims, flat_shape), flat_shape),
        "b_lv": uinit((latent_dims,), flat_shape),
        "w_po": uinit((pose_dims, flat_shape), flat_shape),
        "b_po": uinit((pose_dims,), flat_shape),
    }


def prepare_encoder_params(tp, input_size):
    """One-time (loop-invariant) weight layout / cast / pad for the kernel."""
    convs = []
    H, W = input_size
    Cin = 1
    for (w, b) in tp["convs"]:
        Cout = w.shape[0]
        w2d = jnp.transpose(w, (2, 3, 1, 0)).reshape(9 * Cin, Cout).astype(jnp.float32)
        convs.append((w2d, b.reshape(1, Cout).astype(jnp.float32)))
        H, W, Cin = (H - 1) // 2 + 1, (W - 1) // 2 + 1, Cout

    # Heads: concat (mu | log_var | pose) along out dim, transpose to
    # (flat, n_out), permute rows from NCHW-flatten to NHWC-flatten order
    # (folds the flatten transpose into the static weight), pad out dim to a
    # lane multiple for a lane-dense store.
    w_all = jnp.concatenate([tp["w_mu"], tp["w_lv"], tp["w_po"]], axis=0)   # (n_out, flat)
    b_all = jnp.concatenate([tp["b_mu"], tp["b_lv"], tp["b_po"]], axis=0)
    n_out, flat = w_all.shape
    assert flat == Cin * H * W, (flat, Cin, H, W)
    nhwc_to_nchw = np.transpose(
        np.arange(flat).reshape(Cin, H, W), (1, 2, 0)).reshape(-1)
    wh = jnp.transpose(w_all)[nhwc_to_nchw, :]
    n_out_pad = _round_up(n_out, 128)
    wh = jnp.pad(wh, ((0, 0), (0, n_out_pad - n_out))).astype(jnp.float32)
    bh = jnp.pad(b_all, (0, n_out_pad - n_out)).reshape(1, n_out_pad).astype(jnp.float32)
    return {"convs": convs, "heads_w": wh, "heads_b": bh}


# Pure-JAX reference of the original PyTorch module (torch-layout params).
def encoder_reference(tp, x, *, latent_dims, pose_dims):
    h = x
    for (w, b) in tp["convs"]:
        h = jax.lax.conv_general_dilated(
            h, w, window_strides=(2, 2), padding=((1, 1), (1, 1)),
            dimension_numbers=("NCHW", "OIHW", "NCHW"))
        h = jax.nn.relu(h + b.reshape(1, -1, 1, 1))
    enc = h.reshape(h.shape[0], -1)
    mu = enc @ tp["w_mu"].T + tp["b_mu"]
    lv = enc @ tp["w_lv"].T + tp["b_lv"]
    po = enc @ tp["w_po"].T + tp["b_po"]
    return mu, lv, po


# ----------------------------------------------------------------------------
if __name__ == "__main__":
    depth = 2
    input_size = (16, 16)
    latent_dims = 8
    pose_dims = 4
    batch = 2
    capacity = 8
    filters = [capacity * 2 ** d for d in range(depth)]          # [8, 16]
    flat_shape = filters[-1] * (input_size[0] // 2 ** depth) \
                             * (input_size[1] // 2 ** depth)     # 16*4*4 = 256

    key = jax.random.PRNGKey(0)
    k_param, k_x = jax.random.split(key)

    torch_params = init_encoder_params_torch(k_param, filters, latent_dims,
                                             pose_dims, flat_shape)
    params = prepare_encoder_params(torch_params, input_size)   # one-time prep
    x = jax.random.normal(k_x, (batch, 1) + input_size, jnp.float32)

    fwd = jax.jit(functools.partial(encoder_forward,
                                    latent_dims=latent_dims,
                                    pose_dims=pose_dims))
    mu, log_var, pose = fwd(params, x)
    jax.block_until_ready((mu, log_var, pose))

    assert mu.shape == (batch, latent_dims)
    assert log_var.shape == (batch, latent_dims)
    assert pose.shape == (batch, pose_dims)
    assert bool(jnp.all(jnp.isfinite(mu)))
    assert bool(jnp.all(jnp.isfinite(log_var)))
    assert bool(jnp.all(jnp.isfinite(pose)))

    r_mu, r_lv, r_po = encoder_reference(torch_params, x,
                                         latent_dims=latent_dims,
                                         pose_dims=pose_dims)
    for got, ref in ((mu, r_mu), (log_var, r_lv), (pose, r_po)):
        max_err = float(jnp.max(jnp.abs(got - ref)))
        assert max_err < 5e-2, f"max abs error {max_err}"

    print("KERNEL_OK")
</pallas_src>

<mosaic_0001>
module attributes {stable_mosaic.version = 11 : i64} {
  func.func @kernel(%arg0: i32, %arg1: memref<1x16x16x1xf32, #tpu.memory_space<vmem>>, %arg2: memref<9x8xf32, #tpu.memory_space<vmem>>, %arg3: memref<1x8xf32, #tpu.memory_space<vmem>>, %arg4: memref<72x16xf32, #tpu.memory_space<vmem>>, %arg5: memref<1x16xf32, #tpu.memory_space<vmem>>, %arg6: memref<256x128xf32, #tpu.memory_space<vmem>>, %arg7: memref<1x128xf32, #tpu.memory_space<vmem>>, %arg8: memref<1x1x128xf32, #tpu.memory_space<vmem>>, %arg9: memref<1x18x18x1xf32, #tpu.memory_space<vmem>>, %arg10: memref<1x10x18x8xf32, #tpu.memory_space<vmem>>) attributes {dimension_semantics = [#tpu.dimension_semantics<parallel>], iteration_bounds = array<i64: 2>, scalar_prefetch = 0 : i64, scratch_operands = 2 : i64, tpu.core_type = #tpu.core_type<tc>, window_params = [{transform_indices = @transform_0, window_bounds = array<i64: 1, 16, 16, 1>}, {pipeline_mode = #tpu.pipeline_mode<synchronous>, transform_indices = @transform_1, window_bounds = array<i64: 9, 8>}, {pipeline_mode = #tpu.pipeline_mode<synchronous>, transform_indices = @transform_2, window_bounds = array<i64: 1, 8>}, {pipeline_mode = #tpu.pipeline_mode<synchronous>, transform_indices = @transform_3, window_bounds = array<i64: 72, 16>}, {pipeline_mode = #tpu.pipeline_mode<synchronous>, transform_indices = @transform_4, window_bounds = array<i64: 1, 16>}, {pipeline_mode = #tpu.pipeline_mode<synchronous>, transform_indices = @transform_5, window_bounds = array<i64: 256, 128>}, {pipeline_mode = #tpu.pipeline_mode<synchronous>, transform_indices = @transform_6, window_bounds = array<i64: 1, 128>}, {transform_indices = @transform_7, window_bounds = array<i64: 1, 1, 128>}]} {
    %c0 = arith.constant 0 : index
    %c0_0 = arith.constant 0 : index
    %c0_1 = arith.constant 0 : index
    %c0_2 = arith.constant 0 : index
    %0 = vector.load %arg1[%c0, %c0_0, %c0_1, %c0_2] : memref<1x16x16x1xf32, #tpu.memory_space<vmem>>, vector<1x16x16x1xf32>
    %cst = arith.constant 0.000000e+00 : f32
    %1 = vector.broadcast %cst : f32 to vector<1x18x18x1xf32>
    %c0_3 = arith.constant 0 : index
    %c0_4 = arith.constant 0 : index
    %c0_5 = arith.constant 0 : index
    %c0_6 = arith.constant 0 : index
    %2 = vector.load %arg9[%c0_3, %c0_4, %c0_5, %c0_6] : memref<1x18x18x1xf32, #tpu.memory_space<vmem>>, vector<1x18x18x1xf32>
    tpu.vector_store %arg9[%c0_3, %c0_4, %c0_5, %c0_6], %1 {strides = array<i32>} : memref<1x18x18x1xf32, #tpu.memory_space<vmem>>, vector<1x18x18x1xf32>,
    %c0_7 = arith.constant 0 : index
    %c1 = arith.constant 1 : index
    %c1_8 = arith.constant 1 : index
    %c0_9 = arith.constant 0 : index
    %3 = vector.load %arg9[%c0_7, %c1, %c1_8, %c0_9] : memref<1x18x18x1xf32, #tpu.memory_space<vmem>>, vector<1x16x16x1xf32>
    tpu.vector_store %arg9[%c0_7, %c1, %c1_8, %c0_9], %0 {strides = array<i32>} : memref<1x18x18x1xf32, #tpu.memory_space<vmem>>, vector<1x16x16x1xf32>,
    %c0_10 = arith.constant 0 : index
    %c0_11 = arith.constant 0 : index
    %c0_12 = arith.constant 0 : index
    %c0_13 = arith.constant 0 : index
    %4 = tpu.strided_load %arg9[%c0_10, %c0_11, %c0_12, %c0_13] {strides = array<i32: 1, 1, 2, 1>} : memref<1x18x18x1xf32, #tpu.memory_space<vmem>>, vector<1x18x8x1xf32>
    %5 = vector.extract_strided_slice %4 {offsets = [0, 0, 0, 0], sizes = [1, 16, 8, 1], strides = [1, 1, 1, 1]} : vector<1x18x8x1xf32> to vector<1x16x8x1xf32>
    %6 = vector.shape_cast %5 : vector<1x16x8x1xf32> to vector<1x8x2x8x1xf32>
    %7 = vector.extract_strided_slice %6 {offsets = [0, 0, 0, 0, 0], sizes = [1, 8, 1, 8, 1], strides = [1, 1, 1, 1, 1]} : vector<1x8x2x8x1xf32> to vector<1x8x1x8x1xf32>
    %8 = vector.shape_cast %7 : vector<1x8x1x8x1xf32> to vector<1x8x8x1xf32>
    %9 = vector.extract_strided_slice %4 {offsets = [0, 0, 0, 0], sizes = [1, 16, 8, 1], strides = [1, 1, 1, 1]} : vector<1x18x8x1xf32> to vector<1x16x8x1xf32>
    %10 = vector.shape_cast %9 : vector<1x16x8x1xf32> to vector<1x8x2x8x1xf32>
    %11 = vector.extract_strided_slice %10 {offsets = [0, 0, 1, 0, 0], sizes = [1, 8, 1, 8, 1], strides = [1, 1, 1, 1, 1]} : vector<1x8x2x8x1xf32> to vector<1x8x1x8x1xf32>
    %12 = vector.shape_cast %11 : vector<1x8x1x8x1xf32> to vector<1x8x8x1xf32>
    %13 = vector.extract_strided_slice %4 {offsets = [0, 2, 0, 0], sizes = [1, 16, 8, 1], strides = [1, 1, 1, 1]} : vector<1x18x8x1xf32> to vector<1x16x8x1xf32>
    %14 = vector.shape_cast %13 : vector<1x16x8x1xf32> to vector<1x8x2x8x1xf32>
    %15 = vector.extract_strided_slice %14 {offsets = [0, 0, 0, 0, 0], sizes = [1, 8, 1, 8, 1], strides = [1, 1, 1, 1, 1]} : vector<1x8x2x8x1xf32> to vector<1x8x1x8x1xf32>
    %16 = vector.shape_cast %15 : vector<1x8x1x8x1xf32> to vector<1x8x8x1xf32>
    %c0_14 = arith.constant 0 : index
    %c0_15 = arith.constant 0 : index
    %c1_16 = arith.constant 1 : index
    %c0_17 = arith.constant 0 : index
    %17 = tpu.strided_load %arg9[%c0_14, %c0_15, %c1_16, %c0_17] {strides = array<i32: 1, 1, 2, 1>} : memref<1x18x18x1xf32, #tpu.memory_space<vmem>>, vector<1x18x8x1xf32>
    %18 = vector.extract_strided_slice %17 {offsets = [0, 0, 0, 0], sizes = [1, 16, 8, 1], strides = [1, 1, 1, 1]} : vector<1x18x8x1xf32> to vector<1x16x8x1xf32>
    %19 = vector.shape_cast %18 : vector<1x16x8x1xf32> to vector<1x8x2x8x1xf32>
    %20 = vector.extract_strided_slice %19 {offsets = [0, 0, 0, 0, 0], sizes = [1, 8, 1, 8, 1], strides = [1, 1, 1, 1, 1]} : vector<1x8x2x8x1xf32> to vector<1x8x1x8x1xf32>
    %21 = vector.shape_cast %20 : vector<1x8x1x8x1xf32> to vector<1x8x8x1xf32>
    %22 = vector.extract_strided_slice %17 {offsets = [0, 0, 0, 0], sizes = [1, 16, 8, 1], strides = [1, 1, 1, 1]} : vector<1x18x8x1xf32> to vector<1x16x8x1xf32>
    %23 = vector.shape_cast %22 : vector<1x16x8x1xf32> to vector<1x8x2x8x1xf32>
    %24 = vector.extract_strided_slice %23 {offsets = [0, 0, 1, 0, 0], sizes = [1, 8, 1, 8, 1], strides = [1, 1, 1, 1, 1]} : vector<1x8x2x8x1xf32> to vector<1x8x1x8x1xf32>
    %25 = vector.shape_cast %24 : vector<1x8x1x8x1xf32> to vector<1x8x8x1xf32>
    %26 = vector.extract_strided_slice %17 {offsets = [0, 2, 0, 0], sizes = [1, 16, 8, 1], strides = [1, 1, 1, 1]} : vector<1x18x8x1xf32> to vector<1x16x8x1xf32>
    %27 = vector.shape_cast %26 : vector<1x16x8x1xf32> to vector<1x8x2x8x1xf32>
    %28 = vector.extract_strided_slice %27 {offsets = [0, 0, 0, 0, 0], sizes = [1, 8, 1, 8, 1], strides = [1, 1, 1, 1, 1]} : vector<1x8x2x8x1xf32> to vector<1x8x1x8x1xf32>
    %29 = vector.shape_cast %28 : vector<1x8x1x8x1xf32> to vector<1x8x8x1xf32>
    %c0_18 = arith.constant 0 : index
    %c0_19 = arith.constant 0 : index
    %c2 = arith.constant 2 : index
    %c0_20 = arith.constant 0 : index
    %30 = tpu.strided_load %arg9[%c0_18, %c0_19, %c2, %c0_20] {strides = array<i32: 1, 1, 2, 1>} : memref<1x18x18x1xf32, #tpu.memory_space<vmem>>, vector<1x18x8x1xf32>
    %31 = vector.extract_strided_slice %30 {offsets = [0, 0, 0, 0], sizes = [1, 16, 8, 1], strides = [1, 1, 1, 1]} : vector<1x18x8x1xf32> to vector<1x16x8x1xf32>
    %32 = vector.shape_cast %31 : vector<1x16x8x1xf32> to vector<1x8x2x8x1xf32>
    %33 = vector.extract_strided_slice %32 {offsets = [0, 0, 0, 0, 0], sizes = [1, 8, 1, 8, 1], strides = [1, 1, 1, 1, 1]} : vector<1x8x2x8x1xf32> to vector<1x8x1x8x1xf32>
    %34 = vector.shape_cast %33 : vector<1x8x1x8x1xf32> to vector<1x8x8x1xf32>
    %35 = vector.extract_strided_slice %30 {offsets = [0, 0, 0, 0], sizes = [1, 16, 8, 1], strides = [1, 1, 1, 1]} : vector<1x18x8x1xf32> to vector<1x16x8x1xf32>
    %36 = vector.shape_cast %35 : vector<1x16x8x1xf32> to vector<1x8x2x8x1xf32>
    %37 = vector.extract_strided_slice %36 {offsets = [0, 0, 1, 0, 0], sizes = [1, 8, 1, 8, 1], strides = [1, 1, 1, 1, 1]} : vector<1x8x2x8x1xf32> to vector<1x8x1x8x1xf32>
    %38 = vector.shape_cast %37 : vector<1x8x1x8x1xf32> to vector<1x8x8x1xf32>
    %39 = vector.extract_strided_slice %30 {offsets = [0, 2, 0, 0], sizes = [1, 16, 8, 1], strides = [1, 1, 1, 1]} : vector<1x18x8x1xf32> to vector<1x16x8x1xf32>
    %40 = vector.shape_cast %39 : vector<1x16x8x1xf32> to vector<1x8x2x8x1xf32>
    %41 = vector.extract_strided_slice %40 {offsets = [0, 0, 0, 0, 0], sizes = [1, 8, 1, 8, 1], strides = [1, 1, 1, 1, 1]} : vector<1x8x2x8x1xf32> to vector<1x8x1x8x1xf32>
    %42 = vector.shape_cast %41 : vector<1x8x1x8x1xf32> to vector<1x8x8x1xf32>
    %43 = tpu.concatenate %8, %21, %34, %12, %25, %38, %16, %29, %42 in 3 : vector<1x8x8x1xf32>, vector<1x8x8x1xf32>, vector<1x8x8x1xf32>, vector<1x8x8x1xf32>, vector<1x8x8x1xf32>, vector<1x8x8x1xf32>, vector<1x8x8x1xf32>, vector<1x8x8x1xf32>, vector<1x8x8x1xf32> -> vector<1x8x8x9xf32>
    %44 = vector.shape_cast %43 : vector<1x8x8x9xf32> to vector<64x9xf32>
    %c0_21 = arith.constant 0 : index
    %c0_22 = arith.constant 0 : index
    %45 = vector.load %arg2[%c0_21, %c0_22] : memref<9x8xf32, #tpu.memory_space<vmem>>, vector<9x8xf32>
    %cst_23 = arith.constant dense<0.000000e+00> : vector<64x8xf32>
    %46 = tpu.matmul %44, %45, %cst_23 {dimension_numbers = #tpu.dot_dimension_numbers<[1], [0], [0], [1], [0, 0, 1, 1], [], []>} : vector<64x9xf32>, vector<9x8xf32>, vector<64x8xf32> -> vector<64x8xf32>
    %c0_24 = arith.constant 0 : index
    %c0_25 = arith.constant 0 : index
    %47 = vector.load %arg3[%c0_24, %c0_25] : memref<1x8xf32, #tpu.memory_space<vmem>>, vector<1x8xf32>
    %48 = vector.broadcast %47 : vector<1x8xf32> to vector<64x8xf32>
    %49 = arith.addf %46, %48 : vector<64x8xf32>
    %cst_26 = arith.constant 0.000000e+00 : f32
    %50 = vector.broadcast %cst_26 : f32 to vector<64x8xf32>
    %51 = arith.maximumf %49, %50 : vector<64x8xf32>
    %52 = vector.shape_cast %51 : vector<64x8xf32> to vector<1x8x8x8xf32>
    %cst_27 = arith.constant 0.000000e+00 : f32
    %53 = vector.broadcast %cst_27 : f32 to vector<1x10x18x8xf32>
    %c0_28 = arith.constant 0 : index
    %c0_29 = arith.constant 0 : index
    %c0_30 = arith.constant 0 : index
    %c0_31 = arith.constant 0 : index
    %54 = vector.load %arg10[%c0_28, %c0_29, %c0_30, %c0_31] : memref<1x10x18x8xf32, #tpu.memory_space<vmem>>, vector<1x10x18x8xf32>
    tpu.vector_store %arg10[%c0_28, %c0_29, %c0_30, %c0_31], %53 {strides = array<i32>} : memref<1x10x18x8xf32, #tpu.memory_space<vmem>>, vector<1x10x18x8xf32>,
    %c0_32 = arith.constant 0 : index
    %c1_33 = arith.constant 1 : index
    %c1_34 = arith.constant 1 : index
    %c0_35 = arith.constant 0 : index
    %55 = vector.load %arg10[%c0_32, %c1_33, %c1_34, %c0_35] : memref<1x10x18x8xf32, #tpu.memory_space<vmem>>, vector<1x8x8x8xf32>
    tpu.vector_store %arg10[%c0_32, %c1_33, %c1_34, %c0_35], %52 {strides = array<i32>} : memref<1x10x18x8xf32, #tpu.memory_space<vmem>>, vector<1x8x8x8xf32>,
    %c0_36 = arith.constant 0 : index
    %c0_37 = arith.constant 0 : index
    %c0_38 = arith.constant 0 : index
    %c0_39 = arith.constant 0 : index
    %56 = tpu.strided_load %arg10[%c0_36, %c0_37, %c0_38, %c0_39] {strides = array<i32: 1, 1, 2, 1>} : memref<1x10x18x8xf32, #tpu.memory_space<vmem>>, vector<1x10x8x8xf32>
    %57 = vector.extract_strided_slice %56 {offsets = [0, 0, 0, 0], sizes = [1, 8, 8, 8], strides = [1, 1, 1, 1]} : vector<1x10x8x8xf32> to vector<1x8x8x8xf32>
    %58 = vector.shape_cast %57 : vector<1x8x8x8xf32> to vector<1x4x2x8x8xf32>
    %59 = vector.extract_strided_slice %58 {offsets = [0, 0, 0, 0, 0], sizes = [1, 4, 1, 8, 8], strides = [1, 1, 1, 1, 1]} : vector<1x4x2x8x8xf32> to vector<1x4x1x8x8xf32>
    %60 = vector.shape_cast %59 : vector<1x4x1x8x8xf32> to vector<1x4x8x8xf32>
    %61 = vector.extract_strided_slice %56 {offsets = [0, 0, 0, 0], sizes = [1, 8, 8, 8], strides = [1, 1, 1, 1]} : vector<1x10x8x8xf32> to vector<1x8x8x8xf32>
    %62 = vector.shape_cast %61 : vector<1x8x8x8xf32> to vector<1x4x2x8x8xf32>
    %63 = vector.extract_strided_slice %62 {offsets = [0, 0, 1, 0, 0], sizes = [1, 4, 1, 8, 8], strides = [1, 1, 1, 1, 1]} : vector<1x4x2x8x8xf32> to vector<1x4x1x8x8xf32>
    %64 = vector.shape_cast %63 : vector<1x4x1x8x8xf32> to vector<1x4x8x8xf32>
    %65 = vector.extract_strided_slice %56 {offsets = [0, 2, 0, 0], sizes = [1, 8, 8, 8], strides = [1, 1, 1, 1]} : vector<1x10x8x8xf32> to vector<1x8x8x8xf32>
    %66 = vector.shape_cast %65 : vector<1x8x8x8xf32> to vector<1x4x2x8x8xf32>
    %67 = vector.extract_strided_slice %66 {offsets = [0, 0, 0, 0, 0], sizes = [1, 4, 1, 8, 8], strides = [1, 1, 1, 1, 1]} : vector<1x4x2x8x8xf32> to vector<1x4x1x8x8xf32>
    %68 = vector.shape_cast %67 : vector<1x4x1x8x8xf32> to vector<1x4x8x8xf32>
    %c0_40 = arith.constant 0 : index
    %c0_41 = arith.constant 0 : index
    %c1_42 = arith.constant 1 : index
    %c0_43 = arith.constant 0 : index
    %69 = tpu.strided_load %arg10[%c0_40, %c0_41, %c1_42, %c0_43] {strides = array<i32: 1, 1, 2, 1>} : memref<1x10x18x8xf32, #tpu.memory_space<vmem>>, vector<1x10x8x8xf32>
    %70 = vector.extract_strided_slice %69 {offsets = [0, 0, 0, 0], sizes = [1, 8, 8, 8], strides = [1, 1, 1, 1]} : vector<1x10x8x8xf32> to vector<1x8x8x8xf32>
    %71 = vector.shape_cast %70 : vector<1x8x8x8xf32> to vector<1x4x2x8x8xf32>
    %72 = vector.extract_strided_slice %71 {offsets = [0, 0, 0, 0, 0], sizes = [1, 4, 1, 8, 8], strides = [1, 1, 1, 1, 1]} : vector<1x4x2x8x8xf32> to vector<1x4x1x8x8xf32>
    %73 = vector.shape_cast %72 : vector<1x4x1x8x8xf32> to vector<1x4x8x8xf32>
    %74 = vector.extract_strided_slice %69 {offsets = [0, 0, 0, 0], sizes = [1, 8, 8, 8], strides = [1, 1, 1, 1]} : vector<1x10x8x8xf32> to vector<1x8x8x8xf32>
    %75 = vector.shape_cast %74 : vector<1x8x8x8xf32> to vector<1x4x2x8x8xf32>
    %76 = vector.extract_strided_slice %75 {offsets = [0, 0, 1, 0, 0], sizes = [1, 4, 1, 8, 8], strides = [1, 1, 1, 1, 1]} : vector<1x4x2x8x8xf32> to vector<1x4x1x8x8xf32>
    %77 = vector.shape_cast %76 : vector<1x4x1x8x8xf32> to vector<1x4x8x8xf32>
    %78 = vector.extract_strided_slice %69 {offsets = [0, 2, 0, 0], sizes = [1, 8, 8, 8], strides = [1, 1, 1, 1]} : vector<1x10x8x8xf32> to vector<1x8x8x8xf32>
    %79 = vector.shape_cast %78 : vector<1x8x8x8xf32> to vector<1x4x2x8x8xf32>
    %80 = vector.extract_strided_slice %79 {offsets = [0, 0, 0, 0, 0], sizes = [1, 4, 1, 8, 8], strides = [1, 1, 1, 1, 1]} : vector<1x4x2x8x8xf32> to vector<1x4x1x8x8xf32>
    %81 = vector.shape_cast %80 : vector<1x4x1x8x8xf32> to vector<1x4x8x8xf32>
    %c0_44 = arith.constant 0 : index
    %c0_45 = arith.constant 0 : index
    %c2_46 = arith.constant 2 : index
    %c0_47 = arith.constant 0 : index
    %82 = tpu.strided_load %arg10[%c0_44, %c0_45, %c2_46, %c0_47] {strides = array<i32: 1, 1, 2, 1>} : memref<1x10x18x8xf32, #tpu.memory_space<vmem>>, vector<1x10x8x8xf32>
    %83 = vector.extract_strided_slice %82 {offsets = [0, 0, 0, 0], sizes = [1, 8, 8, 8], strides = [1, 1, 1, 1]} : vector<1x10x8x8xf32> to vector<1x8x8x8xf32>
    %84 = vector.shape_cast %83 : vector<1x8x8x8xf32> to vector<1x4x2x8x8xf32>
    %85 = vector.extract_strided_slice %84 {offsets = [0, 0, 0, 0, 0], sizes = [1, 4, 1, 8, 8], strides = [1, 1, 1, 1, 1]} : vector<1x4x2x8x8xf32> to vector<1x4x1x8x8xf32>
    %86 = vector.shape_cast %85 : vector<1x4x1x8x8xf32> to vector<1x4x8x8xf32>
    %87 = vector.extract_strided_slice %82 {offsets = [0, 0, 0, 0], sizes = [1, 8, 8, 8], strides = [1, 1, 1, 1]} : vector<1x10x8x8xf32> to vector<1x8x8x8xf32>
    %88 = vector.shape_cast %87 : vector<1x8x8x8xf32> to vector<1x4x2x8x8xf32>
    %89 = vector.extract_strided_slice %88 {offsets = [0, 0, 1, 0, 0], sizes = [1, 4, 1, 8, 8], strides = [1, 1, 1, 1, 1]} : vector<1x4x2x8x8xf32> to vector<1x4x1x8x8xf32>
    %90 = vector.shape_cast %89 : vector<1x4x1x8x8xf32> to vector<1x4x8x8xf32>
    %91 = vector.extract_strided_slice %82 {offsets = [0, 2, 0, 0], sizes = [1, 8, 8, 8], strides = [1, 1, 1, 1]} : vector<1x10x8x8xf32> to vector<1x8x8x8xf32>
    %92 = vector.shape_cast %91 : vector<1x8x8x8xf32> to vector<1x4x2x8x8xf32>
    %93 = vector.extract_strided_slice %92 {offsets = [0, 0, 0, 0, 0], sizes = [1, 4, 1, 8, 8], strides = [1, 1, 1, 1, 1]} : vector<1x4x2x8x8xf32> to vector<1x4x1x8x8xf32>
    %94 = vector.shape_cast %93 : vector<1x4x1x8x8xf32> to vector<1x4x8x8xf32>
    %95 = tpu.concatenate %60, %73, %86, %64, %77, %90, %68, %81, %94 in 3 : vector<1x4x8x8xf32>, vector<1x4x8x8xf32>, vector<1x4x8x8xf32>, vector<1x4x8x8xf32>, vector<1x4x8x8xf32>, vector<1x4x8x8xf32>, vector<1x4x8x8xf32>, vector<1x4x8x8xf32>, vector<1x4x8x8xf32> -> vector<1x4x8x72xf32>
    %96 = vector.shape_cast %95 : vector<1x4x8x72xf32> to vector<32x72xf32>
    %c0_48 = arith.constant 0 : index
    %c0_49 = arith.constant 0 : index
    %97 = vector.load %arg4[%c0_48, %c0_49] : memref<72x16xf32, #tpu.memory_space<vmem>>, vector<72x16xf32>
    %cst_50 = arith.constant dense<0.000000e+00> : vector<32x16xf32>
    %98 = tpu.matmul %96, %97, %cst_50 {dimension_numbers = #tpu.dot_dimension_numbers<[1], [0], [0], [1], [0, 0, 1, 1], [], []>} : vector<32x72xf32>, vector<72x16xf32>, vector<32x16xf32> -> vector<32x16xf32>
    %c0_51 = arith.constant 0 : index
    %c0_52 = arith.constant 0 : index
    %99 = vector.load %arg5[%c0_51, %c0_52] : memref<1x16xf32, #tpu.memory_space<vmem>>, vector<1x16xf32>
    %100 = vector.broadcast %99 : vector<1x16xf32> to vector<32x16xf32>
    %101 = arith.addf %98, %100 : vector<32x16xf32>
    %cst_53 = arith.constant 0.000000e+00 : f32
    %102 = vector.broadcast %cst_53 : f32 to vector<32x16xf32>
    %103 = arith.maximumf %101, %102 : vector<32x16xf32>
    %104 = vector.shape_cast %103 : vector<32x16xf32> to vector<1x4x8x16xf32>
    %105 = vector.extract_strided_slice %104 {offsets = [0, 0, 0, 0], sizes = [1, 4, 4, 16], strides = [1, 1, 1, 1]} : vector<1x4x8x16xf32> to vector<1x4x4x16xf32>
    %106 = vector.extract_strided_slice %105 {offsets = [0, 0, 0, 0], sizes = [1, 1, 1, 16], strides = [1, 1, 1, 1]} : vector<1x4x4x16xf32> to vector<1x1x1x16xf32>
    %107 = vector.shape_cast %106 : vector<1x1x1x16xf32> to vector<1x16xf32>
    %108 = vector.extract_strided_slice %105 {offsets = [0, 0, 1, 0], sizes = [1, 1, 1, 16], strides = [1, 1, 1, 1]} : vector<1x4x4x16xf32> to vector<1x1x1x16xf32>
    %109 = vector.shape_cast %108 : vector<1x1x1x16xf32> to vector<1x16xf32>
    %110 = vector.extract_strided_slice %105 {offsets = [0, 0, 2, 0], sizes = [1, 1, 1, 16], strides = [1, 1, 1, 1]} : vector<1x4x4x16xf32> to vector<1x1x1x16xf32>
    %111 = vector.shape_cast %110 : vector<1x1x1x16xf32> to vector<1x16xf32>
    %112 = vector.extract_strided_slice %105 {offsets = [0, 0, 3, 0], sizes = [1, 1, 1, 16], strides = [1, 1, 1, 1]} : vector<1x4x4x16xf32> to vector<1x1x1x16xf32>
    %113 = vector.shape_cast %112 : vector<1x1x1x16xf32> to vector<1x16xf32>
    %114 = vector.extract_strided_slice %105 {offsets = [0, 1, 0, 0], sizes = [1, 1, 1, 16], strides = [1, 1, 1, 1]} : vector<1x4x4x16xf32> to vector<1x1x1x16xf32>
    %115 = vector.shape_cast %114 : vector<1x1x1x16xf32> to vector<1x16xf32>
    %116 = vector.extract_strided_slice %105 {offsets = [0, 1, 1, 0], sizes = [1, 1, 1, 16], strides = [1, 1, 1, 1]} : vector<1x4x4x16xf32> to vector<1x1x1x16xf32>
    %117 = vector.shape_cast %116 : vector<1x1x1x16xf32> to vector<1x16xf32>
    %118 = vector.extract_strided_slice %105 {offsets = [0, 1, 2, 0], sizes = [1, 1, 1, 16], strides = [1, 1, 1, 1]} : vector<1x4x4x16xf32> to vector<1x1x1x16xf32>
    %119 = vector.shape_cast %118 : vector<1x1x1x16xf32> to vector<1x16xf32>
    %120 = vector.extract_strided_slice %105 {offsets = [0, 1, 3, 0], sizes = [1, 1, 1, 16], strides = [1, 1, 1, 1]} : vector<1x4x4x16xf32> to vector<1x1x1x16xf32>
    %121 = vector.shape_cast %120 : vector<1x1x1x16xf32> to vector<1x16xf32>
    %122 = vector.extract_strided_slice %105 {offsets = [0, 2, 0, 0], sizes = [1, 1, 1, 16], strides = [1, 1, 1, 1]} : vector<1x4x4x16xf32> to vector<1x1x1x16xf32>
    %123 = vector.shape_cast %122 : vector<1x1x1x16xf32> to vector<1x16xf32>
    %124 = vector.extract_strided_slice %105 {offsets = [0, 2, 1, 0], sizes = [1, 1, 1, 16], strides = [1, 1, 1, 1]} : vector<1x4x4x16xf32> to vector<1x1x1x16xf32>
    %125 = vector.shape_cast %124 : vector<1x1x1x16xf32> to vector<1x16xf32>
    %126 = vector.extract_strided_slice %105 {offsets = [0, 2, 2, 0], sizes = [1, 1, 1, 16], strides = [1, 1, 1, 1]} : vector<1x4x4x16xf32> to vector<1x1x1x16xf32>
    %127 = vector.shape_cast %126 : vector<1x1x1x16xf32> to vector<1x16xf32>
    %128 = vector.extract_strided_slice %105 {offsets = [0, 2, 3, 0], sizes = [1, 1, 1, 16], strides = [1, 1, 1, 1]} : vector<1x4x4x16xf32> to vector<1x1x1x16xf32>
    %129 = vector.shape_cast %128 : vector<1x1x1x16xf32> to vector<1x16xf32>
    %130 = vector.extract_strided_slice %105 {offsets = [0, 3, 0, 0], sizes = [1, 1, 1, 16], strides = [1, 1, 1, 1]} : vector<1x4x4x16xf32> to vector<1x1x1x16xf32>
    %131 = vector.shape_cast %130 : vector<1x1x1x16xf32> to vector<1x16xf32>
    %132 = vector.extract_strided_slice %105 {offsets = [0, 3, 1, 0], sizes = [1, 1, 1, 16], strides = [1, 1, 1, 1]} : vector<1x4x4x16xf32> to vector<1x1x1x16xf32>
    %133 = vector.shape_cast %132 : vector<1x1x1x16xf32> to vector<1x16xf32>
    %134 = vector.extract_strided_slice %105 {offsets = [0, 3, 2, 0], sizes = [1, 1, 1, 16], strides = [1, 1, 1, 1]} : vector<1x4x4x16xf32> to vector<1x1x1x16xf32>
    %135 = vector.shape_cast %134 : vector<1x1x1x16xf32> to vector<1x16xf32>
    %136 = vector.extract_strided_slice %105 {offsets = [0, 3, 3, 0], sizes = [1, 1, 1, 16], strides = [1, 1, 1, 1]} : vector<1x4x4x16xf32> to vector<1x1x1x16xf32>
    %137 = vector.shape_cast %136 : vector<1x1x1x16xf32> to vector<1x16xf32>
    %138 = tpu.concatenate %107, %109, %111, %113, %115, %117, %119, %121, %123, %125, %127, %129, %131, %133, %135, %137 in 1 : vector<1x16xf32>, vector<1x16xf32>, vector<1x16xf32>, vector<1x16xf32>, vector<1x16xf32>, vector<1x16xf32>, vector<1x16xf32>, vector<1x16xf32>, vector<1x16xf32>, vector<1x16xf32>, vector<1x16xf32>, vector<1x16xf32>, vector<1x16xf32>, vector<1x16xf32>, vector<1x16xf32>, vector<1x16xf32> -> vector<1x256xf32>
    %c0_54 = arith.constant 0 : index
    %c0_55 = arith.constant 0 : index
    %139 = vector.load %arg6[%c0_54, %c0_55] : memref<256x128xf32, #tpu.memory_space<vmem>>, vector<256x128xf32>
    %cst_56 = arith.constant dense<0.000000e+00> : vector<1x128xf32>
    %140 = tpu.matmul %138, %139, %cst_56 {dimension_numbers = #tpu.dot_dimension_numbers<[1], [0], [0], [1], [0, 0, 1, 1], [], []>} : vector<1x256xf32>, vector<256x128xf32>, vector<1x128xf32> -> vector<1x128xf32>
    %c0_57 = arith.constant 0 : index
    %c0_58 = arith.constant 0 : index
    %141 = vector.load %arg7[%c0_57, %c0_58] : memref<1x128xf32, #tpu.memory_space<vmem>>, vector<1x128xf32>
    %142 = arith.addf %140, %141 : vector<1x128xf32>
    %143 = vector.shape_cast %142 : vector<1x128xf32> to vector<1x1x128xf32>
    %c0_59 = arith.constant 0 : index
    %c0_60 = arith.constant 0 : index
    %c0_61 = arith.constant 0 : index
    %144 = vector.load %arg8[%c0_59, %c0_60, %c0_61] : memref<1x1x128xf32, #tpu.memory_space<vmem>>, vector<1x1x128xf32>
    tpu.vector_store %arg8[%c0_59, %c0_60, %c0_61], %143 {strides = array<i32>} : memref<1x1x128xf32, #tpu.memory_space<vmem>>, vector<1x1x128xf32>,
    return
  }
  func.func @transform_0(%arg0: i32) -> (i32, i32, i32, i32) {
    %c0_i32 = arith.constant 0 : i32
    %c0_i32_0 = arith.constant 0 : i32
    %c0_i32_1 = arith.constant 0 : i32
    %c0_i32_2 = arith.constant 0 : i32
    return %arg0, %c0_i32, %c0_i32_0, %c0_i32_1 : i32, i32, i32, i32
  }
  func.func @transform_1(%arg0: i32) -> (i32, i32) {
    %c0_i32 = arith.constant 0 : i32
    %c0_i32_0 = arith.constant 0 : i32
    %c0_i32_1 = arith.constant 0 : i32
    return %c0_i32, %c0_i32_0 : i32, i32
  }
  func.func @transform_2(%arg0: i32) -> (i32, i32) {
    %c0_i32 = arith.constant 0 : i32
    %c0_i32_0 = arith.constant 0 : i32
    %c0_i32_1 = arith.constant 0 : i32
    return %c0_i32, %c0_i32_0 : i32, i32
  }
  func.func @transform_3(%arg0: i32) -> (i32, i32) {
    %c0_i32 = arith.constant 0 : i32
    %c0_i32_0 = arith.constant 0 : i32
    %c0_i32_1 = arith.constant 0 : i32
    return %c0_i32, %c0_i32_0 : i32, i32
  }
  func.func @transform_4(%arg0: i32) -> (i32, i32) {
    %c0_i32 = arith.constant 0 : i32
    %c0_i32_0 = arith.constant 0 : i32
    %c0_i32_1 = arith.constant 0 : i32
    return %c0_i32, %c0_i32_0 : i32, i32
  }
  func.func @transform_5(%arg0: i32) -> (i32, i32) {
    %c0_i32 = arith.constant 0 : i32
    %c0_i32_0 = arith.constant 0 : i32
    %c0_i32_1 = arith.constant 0 : i32
    return %c0_i32, %c0_i32_0 : i32, i32
  }
  func.func @transform_6(%arg0: i32) -> (i32, i32) {
    %c0_i32 = arith.constant 0 : i32
    %c0_i32_0 = arith.constant 0 : i32
    %c0_i32_1 = arith.constant 0 : i32
    return %c0_i32, %c0_i32_0 : i32, i32
  }
  func.func @transform_7(%arg0: i32) -> (i32, i32, i32) {
    %c0_i32 = arith.constant 0 : i32
    %c0_i32_0 = arith.constant 0 : i32
    %c0_i32_1 = arith.constant 0 : i32
    return %arg0, %c0_i32, %c0_i32_0 : i32, i32, i32
  }
}

</mosaic_0001>

<bundles_post_ra>
// kernel: encoder_forward.1
= control target key start
LH: loop header
LB: loop body
LE: loop exit
PB: predicated region body
PF: predicated region fallthrough
CT: control target
= control target key end

     0   :  { %s1811_s24 = smov 0   ;;  %s2487_s0 = inlined_call_operand.vmem [shape: f32[2,16,16,1], index: 0, kind: input, shape index: {}]   ;;  %s2488_s1 = inlined_call_operand.vmem [shape: f32[9,8], index: 1, kind: input, shape index: {}]   ;;  %s2489_s2 = inlined_call_operand.vmem [shape: f32[1,8], index: 2, kind: input, shape index: {}]   ;;  %s2490_s3 = inlined_call_operand.vmem [shape: f32[72,16], index: 3, kind: input, shape index: {}]   ;;  %s2491_s4 = inlined_call_operand.vmem [shape: f32[1,16], index: 4, kind: input, shape index: {}]   ;;  %s2492_s5 = inlined_call_operand.vmem [shape: f32[256,128], index: 5, kind: input, shape index: {}]   ;;  %s2493_s6 = inlined_call_operand.vmem [shape: f32[1,128], index: 6, kind: input, shape index: {}]   ;;  %s2494_s7 = inlined_call_operand.vmem [shape: f32[2,1,128], index: 7, kind: output, shape index: {}]  }
   0x1 LB: > { %s1559_s25 = sadd.s32 4294967295, %s1750_s24   ;;  %p1563_p0 = scmp.ge.s32.totalorder %s1750_s24, 1  ;;  %s1750_s24 = sphi %s1811_s24, %s17_s24  }
   0x2   : > { %p237_p1 = scmp.lt.s32.totalorder %s1750_s24, 3 }
   0x4   : > { %p238_p2 = pnand %p1563_p0, %p237_p1 }
   0x5   : > { %p267_p3 = scmp.lt.s32.totalorder (!%p238_p2), %s1559_s25, 1  ;;  %s1753_s30 = smov (!%p238_p2), 2  }
   0x6   : > { %241 = sbr.rel (%p238_p2) target bundleno = 1149 (0x47d), region = 48  ;;  %s1754_s8 = smov (!%p238_p2), 1  }
   0x7   : > { %s1755_s9 = smov (!%p238_p2), 3   ;;  %s1756_s10 = smov (!%p238_p2), 4  }
   0x8   : > { %s1757_s11 = smov (!%p238_p2), 5   ;;  %s1758_s12 = smov (!%p238_p2), 6  }
   0x9   : > { %s1759_s15 = smov (!%p238_p2), 7   ;;  %s1760_s18 = smov (!%p238_p2), 8  }
   0xa   : > { %s1761_s19 = smov (!%p238_p2), 16   ;;  %s1762_s22 = smov (!%p238_p2), 24  }
   0xb   : > { %vm307_vm0 = vcmask 7168   ;;  %vm310_vm1 = vcmask 1024   ;;  %v1752_v0 = vmov 0.0   ;;  %s2496_s25 = smov (!%p267_p3, %s1559_s25), 1  ;;  %vm801_vm2 = vcmask 64512   ;;  %v810_v51 = vld [vmem:[%s2488_s1] sm:$0xff] }
   0xc   : > { %308 = vst.msk [vmem:[#allocation2] sm:$0xff] %vm307_vm0, %v1752_v0  ;;  %309 = vst.msk [vmem:[#allocation2 + $0x8] sm:$0xff] %vm307_vm0, %v1752_v0  ;;  %s1583_s26 = sshll.u32 %s2496_s25, 8  ;;  %v811_v50 = vld [vmem:[%s2488_s1 + $0x8] sm:$0x1]  ;;  %vm844_vm3 = vcmask 1040384  }
   0xd   : > { %311 = vst.msk [vmem:[#allocation2 + $0x10] sm:$0x3] %vm310_vm1, %v1752_v0  ;;  %314 = vst.msk [vmem:[#allocation2 + $0x28] sm:$0x3] %vm310_vm1, %v1752_v0  ;;  %s1931_s29 = scalar_lea.vmem %s2487_s0, %s1583_s26  ;;  %1642 = vmatprep.subr.msk.mxu1 %vm844_vm3, %v811_v50  ;;  %vm747_vm4 = vcmask 15360   ;;  %vm756_vm5 = vcmask 23552  }
   0xe   : > { %312 = vst.msk [vmem:[#allocation2 + $0x18] sm:$0xff] %vm307_vm0, %v1752_v0  ;;  %313 = vst.msk [vmem:[#allocation2 + $0x20] sm:$0xff] %vm307_vm0, %v1752_v0  ;;  %v277_v1 = vld [vmem:[%s1931_s29 + $0x10] sm:$0xff]  ;;  %v278_v2 = vld [vmem:[%s1931_s29 + $0x18] sm:$0xff]  ;;  %1643 = vmatpush3.msk.msra.mxu1 %vm844_vm3, %v811_v50  ;;  %vm765_vm6 = vcmask 31744   ;;  %vm774_vm7 = vcmask 39936  }
   0xf   : > { %315 = vst.msk [vmem:[#allocation2 + $0x30] sm:$0xff] %vm307_vm0, %v1752_v0  ;;  %316 = vst.msk [vmem:[#allocation2 + $0x38] sm:$0xff] %vm307_vm0, %v1752_v0  ;;  %v279_v3 = vld [vmem:[%s1931_s29 + $0x20] sm:$0xff]  ;;  %v280_v6 = vld [vmem:[%s1931_s29 + $0x28] sm:$0xff]  ;;  %1644 = vmatprep.subr.mxu1 %v810_v51  ;;  %vm783_vm8 = vcmask 48128   ;;  %vm792_vm9 = vcmask 56320  }
  0x10   : > { %317 = vst.msk [vmem:[#allocation2 + $0x40] sm:$0x3] %vm310_vm1, %v1752_v0  ;;  %320 = vst.msk [vmem:[#allocation2 + $0x58] sm:$0x3] %vm310_vm1, %v1752_v0  ;;  %v275_v7 = vld [vmem:[%s1931_s29] sm:$0xff]  ;;  %v276_v8 = vld [vmem:[%s1931_s29 + $0x8] sm:$0xff]  ;;  %1645 = vmatpush3.msra.mxu1 %v810_v51 }
  0x11   : > { %318 = vst.msk [vmem:[#allocation2 + $0x48] sm:$0xff] %vm307_vm0, %v1752_v0  ;;  %319 = vst.msk [vmem:[#allocation2 + $0x50] sm:$0xff] %vm307_vm0, %v1752_v0  ;;  %v281_v9 = vld [vmem:[%s1931_s29 + $0x30] sm:$0xff]  ;;  %v282_v10 = vld [vmem:[%s1931_s29 + $0x38] sm:$0xff]  ;;  %vm819_vm10 = vcmask 72704   ;;  %vm963_vm11 = vcmask 58368  }
  0x12   : > { %321 = vst.msk [vmem:[#allocation2 + $0x60] sm:$0xff] %vm307_vm0, %v1752_v0  ;;  %322 = vst.msk [vmem:[#allocation2 + $0x68] sm:$0xff] %vm307_vm0, %v1752_v0  ;;  %v285_v11 = vld [vmem:[%s1931_s29 + $0x50] sm:$0xff]  ;;  %v286_v12 = vld [vmem:[%s1931_s29 + $0x58] sm:$0xff]  ;;  %s1763_s23 = smov 32   ;;  %s1764_s26 = smov 48  }
  0x13   : > { %323 = vst.msk [vmem:[#allocation2 + $0x70] sm:$0x3] %vm310_vm1, %v1752_v0  ;;  %326 = vst.msk [vmem:[#allocation2 + $0x88] sm:$0x3] %vm310_vm1, %v1752_v0  ;;  %v430_v5 = vld [vmem:[#allocation2 + $0x1] ss:$2 sm:$0xff] }
  0x14   : > { %324 = vst.msk [vmem:[#allocation2 + $0x78] sm:$0xff] %vm307_vm0, %v1752_v0  ;;  %325 = vst.msk [vmem:[#allocation2 + $0x80] sm:$0xff] %vm307_vm0, %v1752_v0  ;;  %v464_v4 = vld [vmem:[#allocation2 + $0x2] ss:$2 sm:$0xff]  ;;  %505 = vrot.lane.b32.xlu0 %v430_v5, %s1754_s8  ;;  %v290_v18 = vld [vmem:[%s1931_s29 + $0x78] sm:$0xff]  ;;  %s1765_s27 = smov 56  }
  0x15   : > { %327 = vst.msk [vmem:[#allocation2 + $0x90] sm:$0xff] %vm307_vm0, %v1752_v0  ;;  %328 = vst.msk [vmem:[#allocation2 + $0x98] sm:$0xff] %vm307_vm0, %v1752_v0  ;;  %537 = vrot.lane.b32.xlu1 %v464_v4, %s1753_s30  ;;  %v283_v13 = vld [vmem:[%s1931_s29 + $0x40] sm:$0xff]  ;;  %v284_v14 = vld [vmem:[%s1931_s29 + $0x48] sm:$0xff]  ;;  %s1766_s28 = smov 64   ;;  %vm1180_vm12 = vcmask 130048  }
  0x16   : > { %329 = vst.msk [vmem:[#allocation2 + $0xa0] sm:$0x3] %vm310_vm1, %v1752_v0  ;;  %332 = vst.msk [vmem:[#allocation2 + $0xb8] sm:$0x3] %vm310_vm1, %v1752_v0  ;;  %v287_v15 = vld [vmem:[%s1931_s29 + $0x60] sm:$0xff]  ;;  %v288_v16 = vld [vmem:[%s1931_s29 + $0x68] sm:$0xff] }
  0x17   : > { %330 = vst.msk [vmem:[#allocation2 + $0xa8] sm:$0xff] %vm307_vm0, %v1752_v0  ;;  %331 = vst.msk [vmem:[#allocation2 + $0xb0] sm:$0xff] %vm307_vm0, %v1752_v0  ;;  %v289_v17 = vld [vmem:[%s1931_s29 + $0x70] sm:$0xff]  ;;  %v294_v20 = vld [vmem:[%s1931_s29 + $0x98] sm:$0xff]  ;;  %vm1185_vm13 = vcmask 195584   ;;  %vm1190_vm14 = vcmask 261120  }
  0x18   : > { %333 = vst.msk [vmem:[#allocation2 + $0xc0] sm:$0xff] %vm307_vm0, %v1752_v0  ;;  %334 = vst.msk [vmem:[#allocation2 + $0xc8] sm:$0xff] %vm307_vm0, %v1752_v0  ;;  %v293_v19 = vld [vmem:[%s1931_s29 + $0x90] sm:$0xff]  ;;  %v291_v21 = vld [vmem:[%s1931_s29 + $0x80] sm:$0xff]  ;;  %vm1195_vm15 = vcmask 326656   ;;  %vm1210_vm3 = vcmask 523264  }
  0x19   : > { %335 = vst.msk [vmem:[#allocation2 + $0xd0] sm:$0x3] %vm310_vm1, %v1752_v0  ;;  %338 = vst.msk [vmem:[#allocation2 + $0xe8] sm:$0x3] %vm310_vm1, %v1752_v0  ;;  %v292_v22 = vld [vmem:[%s1931_s29 + $0x88] sm:$0xff]  ;;  %v295_v23 = vld [vmem:[%s1931_s29 + $0xa0] sm:$0xff] }
  0x1a   : > { %336 = vst.msk [vmem:[#allocation2 + $0xd8] sm:$0xff] %vm307_vm0, %v1752_v0  ;;  %337 = vst.msk [vmem:[#allocation2 + $0xe0] sm:$0xff] %vm307_vm0, %v1752_v0  ;;  %v296_v31 = vld [vmem:[%s1931_s29 + $0xa8] sm:$0xff]  ;;  %v297_v32 = vld [vmem:[%s1931_s29 + $0xb0] sm:$0xff] }
  0x1b   : > { %339 = vst.msk [vmem:[#allocation2 + $0xf0] sm:$0xff] %vm307_vm0, %v1752_v0  ;;  %340 = vst.msk [vmem:[#allocation2 + $0xf8] sm:$0xff] %vm307_vm0, %v1752_v0  ;;  %v298_v34 = vld [vmem:[%s1931_s29 + $0xb8] sm:$0xff]  ;;  %v301_v35 = vld [vmem:[%s1931_s29 + $0xd0] sm:$0xff] }
  0x1c   : > { %341 = vst.msk [vmem:[#allocation2 + $0x100] sm:$0x3] %vm310_vm1, %v1752_v0  ;;  %344 = vst.msk [vmem:[#allocation2 + $0x118] sm:$0x3] %vm310_vm1, %v1752_v0  ;;  %v302_v36 = vld [vmem:[%s1931_s29 + $0xd8] sm:$0xff]  ;;  %v299_v37 = vld [vmem:[%s1931_s29 + $0xc0] sm:$0xff] }
  0x1d   : > { %342 = vst.msk [vmem:[#allocation2 + $0x108] sm:$0xff] %vm307_vm0, %v1752_v0  ;;  %343 = vst.msk [vmem:[#allocation2 + $0x110] sm:$0xff] %vm307_vm0, %v1752_v0  ;;  %v300_v38 = vld [vmem:[%s1931_s29 + $0xc8] sm:$0xff]  ;;  %v303_v39 = vld [vmem:[%s1931_s29 + $0xe0] sm:$0xff] }
  0x1e   : > { %345 = vst.msk [vmem:[#allocation2 + $0x120] sm:$0xff] %vm307_vm0, %v1752_v0  ;;  %346 = vst.msk [vmem:[#allocation2 + $0x128] sm:$0xff] %vm307_vm0, %v1752_v0  ;;  %v304_v40 = vld [vmem:[%s1931_s29 + $0xe8] sm:$0xff]  ;;  %v305_v41 = vld [vmem:[%s1931_s29 + $0xf0] sm:$0xff] }
  0x1f   : > { %347 = vst.msk [vmem:[#allocation2 + $0x130] sm:$0x3] %vm310_vm1, %v1752_v0  ;;  %350 = vst.msk [vmem:[#allocation2 + $0x148] sm:$0x3] %vm310_vm1, %v1752_v0  ;;  %v306_v42 = vld [vmem:[%s1931_s29 + $0xf8] sm:$0xff] }
  0x20   : > { %348 = vst.msk [vmem:[#allocation2 + $0x138] sm:$0xff] %vm307_vm0, %v1752_v0  ;;  %349 = vst.msk [vmem:[#allocation2 + $0x140] sm:$0xff] %vm307_vm0, %v1752_v0 }
  0x21   : > { %351 = vst.msk [vmem:[#allocation2 + $0x150] sm:$0xff] %vm307_vm0, %v1752_v0  ;;  %352 = vst.msk [vmem:[#allocation2 + $0x158] sm:$0xff] %vm307_vm0, %v1752_v0 }
  0x22   : > { %353 = vst.msk [vmem:[#allocation2 + $0x160] sm:$0x3] %vm310_vm1, %v1752_v0  ;;  %356 = vst.msk [vmem:[#allocation2 + $0x178] sm:$0x3] %vm310_vm1, %v1752_v0 }
  0x23   : > { %354 = vst.msk [vmem:[#allocation2 + $0x168] sm:$0xff] %vm307_vm0, %v1752_v0  ;;  %355 = vst.msk [vmem:[#allocation2 + $0x170] sm:$0xff] %vm307_vm0, %v1752_v0 }
  0x24   : > { %357 = vst.msk [vmem:[#allocation2 + $0x180] sm:$0xff] %vm307_vm0, %v1752_v0  ;;  %358 = vst.msk [vmem:[#allocation2 + $0x188] sm:$0xff] %vm307_vm0, %v1752_v0 }
  0x25   : > { %359 = vst.msk [vmem:[#allocation2 + $0x190] sm:$0x3] %vm310_vm1, %v1752_v0  ;;  %vm1205_vm1 = vcmask 457728  }
  0x26   : > { %366 = vst.msk [vmem:[#allocation2 + $0x31] sm:$0xff] %vm307_vm0, %v277_v1  ;;  %367 = vst.msk [vmem:[#allocation2 + $0x39] sm:$0xff] %vm307_vm0, %v278_v2 }
  0x27   : > { %368 = vst.msk [vmem:[#allocation2 + $0x49] sm:$0xff] %vm307_vm0, %v279_v3  ;;  %369 = vst.msk [vmem:[#allocation2 + $0x51] sm:$0xff] %vm307_vm0, %v280_v6 }
  0x28   : > { %364 = vst.msk [vmem:[#allocation2 + $0x19] sm:$0xff] %vm307_vm0, %v275_v7  ;;  %365 = vst.msk [vmem:[#allocation2 + $0x21] sm:$0xff] %vm307_vm0, %v276_v8 }
  0x29   : > { %370 = vst.msk [vmem:[#allocation2 + $0x61] sm:$0xff] %vm307_vm0, %v281_v9  ;;  %371 = vst.msk [vmem:[#allocation2 + $0x69] sm:$0xff] %vm307_vm0, %v282_v10 }
  0x2a   : > { %374 = vst.msk [vmem:[#allocation2 + $0x91] sm:$0xff] %vm307_vm0, %v285_v11  ;;  %375 = vst.msk [vmem:[#allocation2 + $0x99] sm:$0xff] %vm307_vm0, %v286_v12 }
  0x2b   : > { %372 = vst.msk [vmem:[#allocation2 + $0x79] sm:$0xff] %vm307_vm0, %v283_v13  ;;  %373 = vst.msk [vmem:[#allocation2 + $0x81] sm:$0xff] %vm307_vm0, %v284_v14 }
  0x2c   : > { %376 = vst.msk [vmem:[#allocation2 + $0xa9] sm:$0xff] %vm307_vm0, %v287_v15  ;;  %377 = vst.msk [vmem:[#allocation2 + $0xb1] sm:$0xff] %vm307_vm0, %v288_v16 }
  0x2d   : > { %378 = vst.msk [vmem:[#allocation2 + $0xc1] sm:$0xff] %vm307_vm0, %v289_v17  ;;  %379 = vst.msk [vmem:[#allocation2 + $0xc9] sm:$0xff] %vm307_vm0, %v290_v18  ;;  %v1974_v24 = vld [vmem:[#allocation2 + $0x32] ss:$2 sm:$0xff]  ;;  %v1976_v25 = vld [vmem:[#allocation2 + $0x31] ss:$2 sm:$0xff] }
  0x2e   : > { %382 = vst.msk [vmem:[#allocation2 + $0xf1] sm:$0xff] %vm307_vm0, %v293_v19  ;;  %383 = vst.msk [vmem:[#allocation2 + $0xf9] sm:$0xff] %vm307_vm0, %v294_v20  ;;  %539 = vrot.lane.b32.xlu1 %v1974_v24, %s1753_s30  ;;  %507 = vrot.lane.b32.xlu0 %v1976_v25, %s1754_s8  ;;  %v402_v26 = vld [vmem:[#allocation2 + $0x48] ss:$2 sm:$0xff]  ;;  %v436_v30 = vld [vmem:[#allocation2 + $0x49] ss:$2 sm:$0xff] }
  0x2f   : > { %380 = vst.msk [vmem:[#allocation2 + $0xd9] sm:$0xff] %vm307_vm0, %v291_v21  ;;  %381 = vst.msk [vmem:[#allocation2 + $0xe1] sm:$0xff] %vm307_vm0, %v292_v22  ;;  %v398_v27 = vld [vmem:[#allocation2 + $0x18] ss:$2 sm:$0xff]  ;;  %v432_v29 = vld [vmem:[#allocation2 + $0x19] ss:$2 sm:$0xff] }
  0x30   : > { %384 = vst.msk [vmem:[#allocation2 + $0x109] sm:$0xff] %vm307_vm0, %v295_v23  ;;  %v1987_v28 = vld [vmem:[#allocation2 + $0x61] ss:$2 sm:$0xff]  ;;  %v466_v33 = vld [vmem:[#allocation2 + $0x1a] ss:$2 sm:$0xff]  ;;  %385 = vst.msk [vmem:[#allocation2 + $0x111] sm:$0xff] %vm307_vm0, %v296_v31 }
  0x31   : > { %386 = vst.msk [vmem:[#allocation2 + $0x121] sm:$0xff] %vm307_vm0, %v297_v32  ;;  %387 = vst.msk [vmem:[#allocation2 + $0x129] sm:$0xff] %vm307_vm0, %v298_v34  ;;  %v472_v43 = vld [vmem:[#allocation2 + $0x62] ss:$2 sm:$0xff]  ;;  %v2014_v44 = vld [vmem:[#allocation2 + $0x91] ss:$2 sm:$0xff] }
  0x32   : > { %571 = vrot.lane.b32.xlu1 %v402_v26, %s1755_s9  ;;  %569 = vrot.lane.b32.xlu0 %v398_v27, %s1755_s9  ;;  %390 = vst.msk [vmem:[#allocation2 + $0x151] sm:$0xff] %vm307_vm0, %v301_v35  ;;  %391 = vst.msk [vmem:[#allocation2 + $0x159] sm:$0xff] %vm307_vm0, %v302_v36  ;;  %v2021_v45 = vld [vmem:[#allocation2 + $0x30] ss:$2 sm:$0xff]  ;;  %v2067_v49 = vld [vmem:[#allocation2 + $0x60] ss:$2 sm:$0xff] }
  0x33   : > { %388 = vst.msk [vmem:[#allocation2 + $0x139] sm:$0xff] %vm307_vm0, %v299_v37  ;;  %389 = vst.msk [vmem:[#allocation2 + $0x141] sm:$0xff] %vm307_vm0, %v300_v38  ;;  %v470_v46 = vld [vmem:[#allocation2 + $0x4a] ss:$2 sm:$0xff]  ;;  %v440_v52 = vld [vmem:[#allocation2 + $0x79] ss:$2 sm:$0xff] }
  0x34   : > { %392 = vst.msk [vmem:[#allocation2 + $0x169] sm:$0xff] %vm307_vm0, %v303_v39  ;;  %393 = vst.msk [vmem:[#allocation2 + $0x171] sm:$0xff] %vm307_vm0, %v304_v40  ;;  %v406_v47 = vld [vmem:[#allocation2 + $0x78] ss:$2 sm:$0xff]  ;;  %v410_v53 = vld [vmem:[#allocation2 + $0xa8] ss:$2 sm:$0xff] }
  0x35   : > { %394 = vst.msk [vmem:[#allocation2 + $0x181] sm:$0xff] %vm307_vm0, %v305_v41  ;;  %395 = vst.msk [vmem:[#allocation2 + $0x189] sm:$0xff] %vm307_vm0, %v306_v42  ;;  %v2026_v48 = vld [vmem:[#allocation2 + $0x92] ss:$2 sm:$0xff]  ;;  %v444_v54 = vld [vmem:[#allocation2 + $0xa9] ss:$2 sm:$0xff] }
  0x36   : > { %509 = vrot.lane.b32.xlu1 %v1987_v28, %s1754_s8  ;;  %601 = vrot.lane.b32.xlu0 %v432_v29, %s1756_s10  ;;  %961 = vst.msk [vmem:[#allocation3] sm:$0xff] %vm801_vm2, %v1752_v0  ;;  %962 = vst.msk [vmem:[#allocation3 + $0x8] sm:$0xff] %vm801_vm2, %v1752_v0  ;;  %v446_v55 = vld [vmem:[#allocation2 + $0xc1] ss:$2 sm:$0xff]  ;;  %v474_v56 = vld [vmem:[#allocation2 + $0x7a] ss:$2 sm:$0xff] }
  0x37   : > { %965 = vst.msk [vmem:[#allocation3 + $0x18] sm:$0xff] %vm801_vm2, %v1752_v0  ;;  %966 = vst.msk [vmem:[#allocation3 + $0x20] sm:$0xff] %vm801_vm2, %v1752_v0  ;;  %v480_v57 = vld [vmem:[#allocation2 + $0xc2] ss:$2 sm:$0xff]  ;;  %v450_v58 = vld [vmem:[#allocation2 + $0xf1] ss:$2 sm:$0xff] }
  0x38   : > { %968 = vst.msk [vmem:[#allocation3 + $0x30] sm:$0xff] %vm801_vm2, %v1752_v0  ;;  %969 = vst.msk [vmem:[#allocation3 + $0x38] sm:$0xff] %vm801_vm2, %v1752_v0  ;;  %v2091_v59 = vld [vmem:[#allocation2 + $0x90] ss:$2 sm:$0xff]  ;;  %v2098_v63 = vld [vmem:[#allocation2 + $0xc0] ss:$2 sm:$0xff] }
  0x39   : > { %971 = vst.msk [vmem:[#allocation3 + $0x48] sm:$0xff] %vm801_vm2, %v1752_v0  ;;  %972 = vst.msk [vmem:[#allocation3 + $0x50] sm:$0xff] %vm801_vm2, %v1752_v0  ;;  %v478_v60 = vld [vmem:[#allocation2 + $0xaa] ss:$2 sm:$0xff]  ;;  %v448_v1 = vld [vmem:[#allocation2 + $0xd9] ss:$2 sm:$0xff] }
  0x3a   : > { %633 = vrot.lane.b32.xlu1 %v466_v33, %s1757_s11  ;;  %603 = vrot.lane.b32.xlu0 %v436_v30, %s1756_s10  ;;  %974 = vst.msk [vmem:[#allocation3 + $0x60] sm:$0xff] %vm801_vm2, %v1752_v0  ;;  %975 = vst.msk [vmem:[#allocation3 + $0x68] sm:$0xff] %vm801_vm2, %v1752_v0  ;;  %v414_v61 = vld [vmem:[#allocation2 + $0xd8] ss:$2 sm:$0xff]  ;;  %v418_v2 = vld [vmem:[#allocation2 + $0x108] ss:$2 sm:$0xff] }
  0x3b   : > { %977 = vst.msk [vmem:[#allocation3 + $0x78] sm:$0xff] %vm801_vm2, %v1752_v0  ;;  %978 = vst.msk [vmem:[#allocation3 + $0x80] sm:$0xff] %vm801_vm2, %v1752_v0  ;;  %v484_v62 = vld [vmem:[#allocation2 + $0xf2] ss:$2 sm:$0xff]  ;;  %v452_v3 = vld [vmem:[#allocation2 + $0x109] ss:$2 sm:$0xff] }
  0x3c   : > { %980 = vst.msk [vmem:[#allocation3 + $0x90] sm:$0xff] %vm801_vm2, %v1752_v0  ;;  %981 = vst.msk [vmem:[#allocation3 + $0x98] sm:$0xff] %vm801_vm2, %v1752_v0  ;;  %v454_v4 = vld [vmem:[#allocation2 + $0x121] ss:$2 sm:$0xff]  ;;  %v482_v5 = vld [vmem:[#allocation2 + $0xda] ss:$2 sm:$0xff] }
  0x3d   : > { %983 = vst.msk [vmem:[#allocation3 + $0xa8] sm:$0xff] %vm801_vm2, %v1752_v0  ;;  %984 = vst.msk [vmem:[#allocation3 + $0xb0] sm:$0xff] %vm801_vm2, %v1752_v0  ;;  %v488_v6 = vld [vmem:[#allocation2 + $0x122] ss:$2 sm:$0xff]  ;;  %v458_v7 = vld [vmem:[#allocation2 + $0x151] ss:$2 sm:$0xff] }
  0x3e   : > { %541 = vrot.lane.b32.xlu1 %v472_v43, %s1753_s30  ;;  %511 = vrot.lane.b32.xlu0 %v2014_v44, %s1754_s8  ;;  %986 = vst.msk [vmem:[#allocation3 + $0xc0] sm:$0xff] %vm801_vm2, %v1752_v0  ;;  %987 = vst.msk [vmem:[#allocation3 + $0xc8] sm:$0xff] %vm801_vm2, %v1752_v0  ;;  %v2115_v8 = vld [vmem:[#allocation2 + $0xf0] ss:$2 sm:$0xff]  ;;  %v2122_v12 = vld [vmem:[#allocation2 + $0x120] ss:$2 sm:$0xff] }
  0x3f   : > { %v486_v9 = vld [vmem:[#allocation2 + $0x10a] ss:$2 sm:$0xff]  ;;  %v456_v13 = vld [vmem:[#allocation2 + $0x139] ss:$2 sm:$0xff]  ;;  %v490_v15 = vld [vmem:[#allocation2 + $0x13a] ss:$2 sm:$0xff] }
  0x40   : > { %v422_v10 = vld [vmem:[#allocation2 + $0x138] ss:$2 sm:$0xff]  ;;  %v426_v14 = vld [vmem:[#allocation2 + $0x168] ss:$2 sm:$0xff]  ;;  %v460_v16 = vld [vmem:[#allocation2 + $0x169] ss:$2 sm:$0xff] }
  0x41   : > { %v492_v11 = vld [vmem:[#allocation2 + $0x152] ss:$2 sm:$0xff]  ;;  %v462_v22 = vld [vmem:[#allocation2 + $0x181] ss:$2 sm:$0xff]  ;;  %964 = vst.msk [vmem:[#allocation3 + $0x10] sm:$0x3] %vm963_vm11, %v1752_v0 }
  0x42   : > { %665 = vrot.lane.b32.xlu1 %v2021_v45, %s1758_s12  ;;  %635 = vrot.lane.b32.xlu0 %v470_v46, %s1757_s11  ;;  %v494_v17 = vld [vmem:[#allocation2 + $0x16a] ss:$2 sm:$0xff]  ;;  %967 = vst.msk [vmem:[#allocation3 + $0x28] sm:$0x3] %vm963_vm11, %v1752_v0  ;;  %970 = vst.msk [vmem:[#allocation3 + $0x40] sm:$0x3] %vm963_vm11, %v1752_v0 }
  0x43   : > { %v428_v20 = vld [vmem:[#allocation2 + $0x180] ss:$2 sm:$0xff]  ;;  %v2135_v21 = vld [vmem:[#allocation2 + $0x150] ss:$2 sm:$0xff]  ;;  %973 = vst.msk [vmem:[#allocation3 + $0x58] sm:$0x3] %vm963_vm11, %v1752_v0 }
  0x44   : > { %v396_v38 = vld [vmem:[#allocation2] ss:$2 sm:$0xff]  ;;  %976 = vst.msk [vmem:[#allocation3 + $0x70] sm:$0x3] %vm963_vm11, %v1752_v0  ;;  %979 = vst.msk [vmem:[#allocation3 + $0x88] sm:$0x3] %vm963_vm11, %v1752_v0 }
  0x45   : > { %982 = vst.msk [vmem:[#allocation3 + $0xa0] sm:$0x3] %vm963_vm11, %v1752_v0  ;;  %985 = vst.msk [vmem:[#allocation3 + $0xb8] sm:$0x3] %vm963_vm11, %v1752_v0 }
  0x46   : > { %573 = vrot.lane.b32.xlu1 %v406_v47, %s1755_s9  ;;  %543 = vrot.lane.b32.xlu0 %v2026_v48, %s1753_s30  ;;  %988 = vst.msk [vmem:[#allocation3 + $0xd0] sm:$0x3] %vm963_vm11, %v1752_v0 }
  0x4a   : > { %690 = vrot.lane.b32.xlu1 %v1976_v25, %s1759_s15  ;;  %667 = vrot.lane.b32.xlu0 %v2067_v49, %s1758_s12  ;;  %v496_v25 = vld [vmem:[#allocation2 + $0x182] ss:$2 sm:$0xff] }
  0x4e   : > { %605 = vrot.lane.b32.xlu1 %v440_v52, %s1756_s10  ;;  %575 = vrot.lane.b32.xlu0 %v410_v53, %s1755_s9 }
  0x52   : > { %715 = vrot.lane.b32.xlu1 %v1974_v24, %s1760_s18  ;;  %692 = vrot.lane.b32.xlu0 %v1987_v28, %s1759_s15 }
  0x56   : > { %607 = vrot.lane.b32.xlu1 %v444_v54, %s1756_s10  ;;  %513 = vrot.lane.b32.xlu0 %v446_v55, %s1754_s8 }
  0x5a   : > { %717 = vrot.lane.b32.xlu1 %v472_v43, %s1760_s18  ;;  %637 = vrot.lane.b32.xlu0 %v474_v56, %s1757_s11 }
  0x5e   : > { %545 = vrot.lane.b32.xlu1 %v480_v57, %s1753_s30  ;;  %515 = vrot.lane.b32.xlu0 %v450_v58, %s1754_s8 }
  0x62   : > { %669 = vrot.lane.b32.xlu1 %v2091_v59, %s1758_s12  ;;  %639 = vrot.lane.b32.xlu0 %v478_v60, %s1757_s11 }
  0x66   : > { %577 = vrot.lane.b32.xlu1 %v414_v61, %s1755_s9  ;;  %547 = vrot.lane.b32.xlu0 %v484_v62, %s1753_s30 }
  0x6a   : > { %694 = vrot.lane.b32.xlu1 %v2014_v44, %s1759_s15  ;;  %671 = vrot.lane.b32.xlu0 %v2098_v63, %s1758_s12 }
  0x6e   : > { %609 = vrot.lane.b32.xlu1 %v448_v1, %s1756_s10  ;;  %579 = vrot.lane.b32.xlu0 %v418_v2, %s1755_s9 }
  0x72   : > { %719 = vrot.lane.b32.xlu1 %v2026_v48, %s1760_s18  ;;  %696 = vrot.lane.b32.xlu0 %v446_v55, %s1759_s15 }
  0x76   : > { %611 = vrot.lane.b32.xlu1 %v452_v3, %s1756_s10  ;;  %517 = vrot.lane.b32.xlu0 %v454_v4, %s1754_s8 }
  0x7a   : > { %721 = vrot.lane.b32.xlu1 %v480_v57, %s1760_s18  ;;  %641 = vrot.lane.b32.xlu0 %v482_v5, %s1757_s11 }
  0x7e   : > { %549 = vrot.lane.b32.xlu1 %v488_v6, %s1753_s30  ;;  %519 = vrot.lane.b32.xlu0 %v458_v7, %s1754_s8  ;;  %s1767_s8 = smov 40  }
  0x82   : > { %673 = vrot.lane.b32.xlu1 %v2115_v8, %s1758_s12  ;;  %643 = vrot.lane.b32.xlu0 %v486_v9, %s1757_s11 }
  0x86   : > { %581 = vrot.lane.b32.xlu1 %v422_v10, %s1755_s9  ;;  %551 = vrot.lane.b32.xlu0 %v492_v11, %s1753_s30  ;;  %v506_v19 = vpop.permute.xlu0 %505 }
  0x87   : > { %v538_v18 = vpop.permute.xlu1 %537  ;;  %v739_v39 = vsel %vm307_vm0, %v396_v38, %v506_v19 }
  0x88   : > { %v748_v42 = vsel %vm747_vm4, %v739_v39, %v538_v18 }
  0x8a   : > { %698 = vrot.lane.b32.xlu1 %v450_v58, %s1759_s15  ;;  %675 = vrot.lane.b32.xlu0 %v2122_v12, %s1758_s12 }
  0x8e   : > { %613 = vrot.lane.b32.xlu1 %v456_v13, %s1756_s10  ;;  %583 = vrot.lane.b32.xlu0 %v426_v14, %s1755_s9  ;;  %s1768_s9 = smov 80  }
  0x92   : > { %723 = vrot.lane.b32.xlu1 %v484_v62, %s1760_s18  ;;  %700 = vrot.lane.b32.xlu0 %v454_v4, %s1759_s15 }
  0x96   : > { %645 = vrot.lane.b32.xlu1 %v490_v15, %s1757_s11  ;;  %615 = vrot.lane.b32.xlu0 %v460_v16, %s1756_s10  ;;  %s1769_s10 = smov 96  }
  0x9a   : > { %647 = vrot.lane.b32.xlu1 %v494_v17, %s1757_s11  ;;  %725 = vrot.lane.b32.xlu0 %v488_v6, %s1760_s18  ;;  %s1770_s11 = smov 112  }
  0x9e   : > { %679 = vrot.lane.b32.xlu1 %v428_v20, %s1758_s12  ;;  %677 = vrot.lane.b32.xlu0 %v2135_v21, %s1758_s12 }
  0xa0   : > { %v540_v23 = vpop.permute.xlu1 %539  ;;  %v508_v24 = vpop.permute.xlu0 %507 }
  0xa1   : > { %v740_v51 = vsel %vm307_vm0, %v2021_v45, %v508_v24 }
  0xa2   : > { %704 = vrot.lane.b32.xlu1 %v462_v22, %s1759_s15  ;;  %702 = vrot.lane.b32.xlu0 %v458_v7, %s1759_s15  ;;  %v749_v56 = vsel %vm747_vm4, %v740_v51, %v540_v23 }
  0xa4   : > { %v572_v26 = vpop.permute.xlu1 %571  ;;  %v570_v27 = vpop.permute.xlu0 %569 }
  0xa5   : > { %v757_v43 = vsel %vm756_vm5, %v748_v42, %v570_v27  ;;  %v758_v57 = vsel %vm756_vm5, %v749_v56, %v572_v26 }
  0xa6   : > { %729 = vrot.lane.b32.xlu1 %v496_v25, %s1760_s18  ;;  %727 = vrot.lane.b32.xlu0 %v492_v11, %s1760_s18 }
  0xa8   : > { %v510_v28 = vpop.permute.xlu1 %509  ;;  %v602_v29 = vpop.permute.xlu0 %601 }
  0xa9   : > { %v766_v47 = vsel %vm765_vm6, %v757_v43, %v602_v29  ;;  %v741_v15 = vsel %vm307_vm0, %v2067_v49, %v510_v28 }
  0xac   : > { %v634_v30 = vpop.permute.xlu1 %633  ;;  %v604_v31 = vpop.permute.xlu0 %603 }
  0xad   : > { %v775_v48 = vsel %vm774_vm7, %v766_v47, %v634_v30  ;;  %v767_v61 = vsel %vm765_vm6, %v758_v57, %v604_v31 }
  0xb0   : > { %v542_v32 = vpop.permute.xlu1 %541  ;;  %v512_v33 = vpop.permute.xlu0 %511 }
  0xb1   : > { %v750_v16 = vsel %vm747_vm4, %v741_v15, %v542_v32  ;;  %v742_v49 = vsel %vm307_vm0, %v2091_v59, %v512_v33 }
  0xb4   : > { %v666_v34 = vpop.permute.xlu1 %665  ;;  %v636_v35 = vpop.permute.xlu0 %635 }
  0xb5   : > { %v784_v50 = vsel %vm783_vm8, %v775_v48, %v666_v34  ;;  %v776_v62 = vsel %vm774_vm7, %v767_v61, %v636_v35 }
  0xb8   : > { %v574_v36 = vpop.permute.xlu1 %573  ;;  %v544_v37 = vpop.permute.xlu0 %543 }
  0xb9   : > { %v759_v17 = vsel %vm756_vm5, %v750_v16, %v574_v36  ;;  %v751_v28 = vsel %vm747_vm4, %v742_v49, %v544_v37 }
  0xbc   : > { %v691_v40 = vpop.permute.xlu1 %690  ;;  %v668_v41 = vpop.permute.xlu0 %667 }
  0xbd   : > { %v793_v52 = vsel %vm792_vm9, %v784_v50, %v691_v40  ;;  %v785_v45 = vsel %vm783_vm8, %v776_v62, %v668_v41 }
  0xc0   : > { %v606_v44 = vpop.permute.xlu1 %605  ;;  %v576_v46 = vpop.permute.xlu0 %575 }
  0xc1   : > { %v768_v20 = vsel %vm765_vm6, %v759_v17, %v606_v44  ;;  %v760_v29 = vsel %vm756_vm5, %v751_v28, %v576_v46  ;;  %v1037_v28 = vld [vmem:[#allocation3 + $0x2] ss:$2 sm:$0xff] }
  0xc4   : > { %v716_v53 = vpop.permute.xlu1 %715  ;;  %v693_v54 = vpop.permute.xlu0 %692 }
  0xc5   : > { %v802_v55 = vsel %vm801_vm2, %v793_v52, %v716_v53  ;;  %v794_v1 = vsel %vm792_vm9, %v785_v45, %v693_v54 }
  0xc6   : > { %1646 = vmatprep.mubr.msk.f32.mxu1 %vm819_vm10, %v802_v55 }
  0xc8   : > { %v608_v58 = vpop.permute.xlu1 %607  ;;  %v514_v60 = vpop.permute.xlu0 %513 }
  0xc9   : > { %v769_v32 = vsel %vm765_vm6, %v760_v29, %v608_v58  ;;  %v743_v47 = vsel %vm307_vm0, %v2098_v63, %v514_v60 }
  0xcc   : > { %v718_v2 = vpop.permute.xlu1 %717  ;;  %v638_v3 = vpop.permute.xlu0 %637 }
  0xcd   : > { %v803_v4 = vsel %vm801_vm2, %v794_v1, %v718_v2  ;;  %v777_v22 = vsel %vm774_vm7, %v768_v20, %v638_v3  ;;  %v1019_v20 = vld [vmem:[#allocation3 + $0x1] ss:$2 sm:$0xff] }
  0xce   : > { %1647 = vmatmul.mubr.msk.f32.vlgmr.msra.gmra.mxu1 %vm819_vm10, %v803_v4  ;;  %1058 = vrot.lane.b32.xlu0 %v1019_v20, %s1760_s18 }
  0xd0   : > { %v546_v5 = vpop.permute.xlu1 %545  ;;  %v516_v6 = vpop.permute.xlu0 %515 }
  0xd1   : > { %v752_v48 = vsel %vm747_vm4, %v743_v47, %v546_v5  ;;  %v744_v63 = vsel %vm307_vm0, %v2115_v8, %v516_v6 }
  0xd2   : > { %1074 = vrot.lane.b32.xlu0 %v1037_v28, %s1761_s19 }
  0xd4   : > { %v670_v7 = vpop.permute.xlu1 %669  ;;  %v640_v9 = vpop.permute.xlu0 %639 }
  0xd5   : > { %v786_v23 = vsel %vm783_vm8, %v777_v22, %v670_v7  ;;  %v778_v34 = vsel %vm774_vm7, %v769_v32, %v640_v9 }
  0xd8   : > { %v578_v10 = vpop.permute.xlu1 %577  ;;  %v548_v11 = vpop.permute.xlu0 %547 }
  0xd9   : > { %v761_v50 = vsel %vm756_vm5, %v752_v48, %v578_v10  ;;  %v753_v60 = vsel %vm747_vm4, %v744_v63, %v548_v11  ;;  %v1216_v63 = vld [vmem:[%s2490_s3 + $0x8] sm:$0xff] }
  0xdc   : > { %v695_v13 = vpop.permute.xlu1 %694  ;;  %v672_v14 = vpop.permute.xlu0 %671 }
  0xdd   : > { %v795_v24 = vsel %vm792_vm9, %v786_v23, %v695_v13  ;;  %v787_v35 = vsel %vm783_vm8, %v778_v34, %v672_v14 }
  0xe0   : > { %v610_v18 = vpop.permute.xlu1 %609  ;;  %v580_v19 = vpop.permute.xlu0 %579 }
  0xe1   : > { %v770_v53 = vsel %vm765_vm6, %v761_v50, %v610_v18  ;;  %v762_v62 = vsel %vm756_vm5, %v753_v60, %v580_v19 }
  0xe4   : > { %v720_v25 = vpop.permute.xlu1 %719  ;;  %v697_v26 = vpop.permute.xlu0 %696 }
  0xe5   : > { %v804_v27 = vsel %vm801_vm2, %v795_v24, %v720_v25  ;;  %v796_v36 = vsel %vm792_vm9, %v787_v35, %v697_v26 }
  0xe6   : > { %1649 = vmatprep.mubr.msk.f32.mxu1 %vm819_vm10, %v804_v27 }
  0xe8   : > { %v612_v30 = vpop.permute.xlu1 %611  ;;  %v518_v31 = vpop.permute.xlu0 %517 }
  0xe9   : > { %v771_v2 = vsel %vm765_vm6, %v762_v62, %v612_v30  ;;  %v745_v11 = vsel %vm307_vm0, %v2122_v12, %v518_v31  ;;  %v2237_v31 = vld [vmem:[%s2489_s2] ss:$0 sm:$0xff] }
  0xea   : > { %v1215_v62 = vld [vmem:[%s2490_s3] sm:$0xff] }
  0xec   : > { %v722_v38 = vpop.permute.xlu1 %721  ;;  %v642_v39 = vpop.permute.xlu0 %641 }
  0xed   : > { %v805_v59 = vsel %vm801_vm2, %v796_v36, %v722_v38  ;;  %v779_v54 = vsel %vm774_vm7, %v770_v53, %v642_v39 }
  0xee   : > { %1650 = vmatmul.mubr.msk.f32.gmra.mxu1 %vm819_vm10, %v805_v59 }
  0xf0   : > { %v550_v33 = vpop.permute.xlu1 %549  ;;  %v520_v37 = vpop.permute.xlu0 %519 }
  0xf1   : > { %v746_v13 = vsel %vm307_vm0, %v2135_v21, %v520_v37  ;;  %v754_v14 = vsel %vm747_vm4, %v745_v11, %v550_v33  ;;  %vm1200_vm0 = vcmask 392192  }
  0xf4   : > { %v674_v40 = vpop.permute.xlu1 %673  ;;  %v644_v41 = vpop.permute.xlu0 %643 }
  0xf5   : > { %v788_v55 = vsel %vm783_vm8, %v779_v54, %v674_v40  ;;  %v780_v3 = vsel %vm774_vm7, %v771_v2, %v644_v41  ;;  %v1220_v54 = vld [vmem:[%s2490_s3 + $0x28] sm:$0xff] }
  0xf8   : > { %v582_v42 = vpop.permute.xlu1 %581  ;;  %v552_v43 = vpop.permute.xlu0 %551 }
  0xf9   : > { %v755_v15 = vsel %vm747_vm4, %v746_v13, %v552_v43  ;;  %v763_v16 = vsel %vm756_vm5, %v754_v14, %v582_v42  ;;  %vm1231_vm4 = vcmask 588800  }
  0xfc   : > { %v699_v44 = vpop.permute.xlu1 %698  ;;  %v676_v46 = vpop.permute.xlu0 %675 }
  0xfd   : > { %v797_v56 = vsel %vm792_vm9, %v788_v55, %v699_v44  ;;  %v789_v4 = vsel %vm783_vm8, %v780_v3, %v676_v46  ;;  %v1223_v44 = vld [vmem:[%s2490_s3 + $0x40] sm:$0xff] }
  0xfe   : > { %1658 = vmatprep.subr.mxu1 %v1223_v44  ;;  %v1219_v55 = vld [vmem:[%s2490_s3 + $0x20] sm:$0xff] }
  0xff   : > { %1659 = vmatpush3.msra.mxu1 %v1223_v44 }
 0x100   : > { %v614_v51 = vpop.permute.xlu1 %613  ;;  %v584_v52 = vpop.permute.xlu0 %583 }
 0x101   : > { %v764_v17 = vsel %vm756_vm5, %v755_v15, %v584_v52  ;;  %v772_v22 = vsel %vm765_vm6, %v763_v16, %v614_v51  ;;  %v1222_v51 = vld [vmem:[%s2490_s3 + $0x38] sm:$0xff]  ;;  %v1221_v52 = vld [vmem:[%s2490_s3 + $0x30] sm:$0xff]  ;;  %vm1397_vm5 = vcmask 785408  }
 0x102   : > { %1660 = vmatprep.subr.mxu1 %v1222_v51 }
 0x103   : > { %1661 = vmatpush3.msra.mxu1 %v1222_v51 }
 0x104   : > { %v724_v57 = vpop.permute.xlu1 %723  ;;  %v701_v58 = vpop.permute.xlu0 %700  ;;  %1662 = vmatprep.subr.mxu1 %v1221_v52 }
 0x105   : > { %v806_v61 = vsel %vm801_vm2, %v797_v56, %v724_v57  ;;  %v798_v5 = vsel %vm792_vm9, %v789_v4, %v701_v58  ;;  %1663 = vmatpush3.msra.mxu1 %v1221_v52  ;;  %v1218_v56 = vld [vmem:[%s2490_s3 + $0x18] sm:$0xff] }
 0x106   : > { %1652 = vmatprep.mubr.msk.f32.mxu1 %vm819_vm10, %v806_v61  ;;  %1664 = vmatprep.subr.mxu1 %v1220_v54  ;;  %v1217_v61 = vld [vmem:[%s2490_s3 + $0x10] sm:$0xff] }
 0x107   : > { %1665 = vmatpush3.msra.mxu1 %v1220_v54 }
 0x108   : > { %v646_v45 = vpop.permute.xlu1 %645  ;;  %v616_v1 = vpop.permute.xlu0 %615  ;;  %1666 = vmatprep.subr.mxu1 %v1219_v55 }
 0x109   : > { %v773_v0 = vsel %vm765_vm6, %v764_v17, %v616_v1  ;;  %v781_v12 = vsel %vm774_vm7, %v772_v22, %v646_v45  ;;  %1667 = vmatpush3.msra.mxu1 %v1219_v55  ;;  %vm1399_vm6 = vcmask 916480  }
 0x10a   : > { %1668 = vmatprep.subr.mxu1 %v1218_v56 }
 0x10b   : > { %1669 = vmatpush3.msra.mxu1 %v1218_v56 }
 0x10c   : > { %v648_v7 = vpop.permute.xlu1 %647  ;;  %v726_v9 = vpop.permute.xlu0 %725  ;;  %1670 = vmatprep.subr.mxu1 %v1217_v61 }
 0x10d   : > { %v807_v8 = vsel %vm801_vm2, %v798_v5, %v726_v9  ;;  %v782_v21 = vsel %vm774_vm7, %v773_v0, %v648_v7  ;;  %1671 = vmatpush3.msra.mxu1 %v1217_v61 }
 0x10e   : > { %1653 = vmatmul.mubr.msk.f32.gmra.mxu1 %vm819_vm10, %v807_v8  ;;  %1672 = vmatprep.subr.mxu1 %v1216_v63 }
 0x10f   : > { %1673 = vmatpush3.msra.mxu1 %v1216_v63 }
 0x110   : > { %v680_v6 = vpop.permute.xlu1 %679  ;;  %v678_v10 = vpop.permute.xlu0 %677  ;;  %1674 = vmatprep.subr.mxu1 %v1215_v62 }
 0x111   : > { %v791_v23 = vsel %vm783_vm8, %v782_v21, %v680_v6  ;;  %v790_v24 = vsel %vm783_vm8, %v781_v12, %v678_v10  ;;  %1675 = vmatpush3.msra.mxu1 %v1215_v62 }
 0x114   : > { %v705_v18 = vpop.permute.xlu1 %704  ;;  %v703_v19 = vpop.permute.xlu0 %702 }
 0x115   : > { %v800_v25 = vsel %vm792_vm9, %v791_v23, %v705_v18  ;;  %v799_v26 = vsel %vm792_vm9, %v790_v24, %v703_v19 }
 0x118   : > { %v730_v27 = vpop.permute.xlu1 %729  ;;  %v728_v49 = vpop.permute.xlu0 %727 }
 0x119   : > { %v809_v29 = vsel %vm801_vm2, %v800_v25, %v730_v27  ;;  %v808_v30 = vsel %vm801_vm2, %v799_v26, %v728_v49 }
 0x11a   : > { %1655 = vmatprep.mubr.msk.f32.mxu1 %vm819_vm10, %v808_v30  ;;  %v1001_v30 = vld [vmem:[#allocation3] ss:$2 sm:$0xff] }
 0x11b   : > { %1656 = vmatmul.mubr.msk.f32.gmra.mxu1 %vm819_vm10, %v809_v29 }
 0x140   : > { %v1059_v26 = vpop.permute.xlu0 %1058 }
 0x144   : > { %v1075_v28 = vpop.permute.xlu0 %1074 }
 0x18e   : > { %v1648_v32 = vpop.f32.mrf.mxu1 }
 0x18f   : > { %v920_v34 = vadd.f32 %v1648_v32, %v2237_v31 }
 0x190   : > { %v914_v35 = vpop.f32.mrf.mxu1 }
 0x191   : > { %v954_v36 = vmax.f32 %v920_v34, 0.0  ;;  %v915_v38 = vadd.f32 %v2237_v31, %v914_v35  ;;  %v1176_v34 = vsel %vm801_vm2, %v1001_v30, %v1059_v26  ;;  %v1437_v30 = vld [vmem:[%s2492_s5 + $0xe8] sm:$0xff] }
 0x192   : > { %v1181_v35 = vsel %vm1180_vm12, %v1176_v34, %v1075_v28  ;;  %v1438_v28 = vld [vmem:[%s2492_s5 + $0xf0] sm:$0xff]  ;;  %v1420_v34 = vld [vmem:[%s2492_s5 + $0x60] sm:$0xff] }
 0x193   : > { %994 = vst.msk [vmem:[#allocation3 + $0x31] sm:$0xff] %vm801_vm2, %v954_v36  ;;  %v953_v39 = vmax.f32 %v915_v38, 0.0 }
 0x195   : > { %993 = vst.msk [vmem:[#allocation3 + $0x19] sm:$0xff] %vm801_vm2, %v953_v39 }
 0x19a   : > { %v1023_v59 = vld [vmem:[#allocation3 + $0x31] ss:$2 sm:$0xff]  ;;  %v1041_v37 = vld [vmem:[#allocation3 + $0x32] ss:$2 sm:$0xff] }
 0x19b   : > { %1060 = vrot.lane.b32.xlu1 %v1023_v59, %s1760_s18  ;;  %v2247_v41 = vld [vmem:[#allocation3 + $0x30] ss:$2 sm:$0xff] }
 0x19c   : > { %v1003_v33 = vld [vmem:[#allocation3 + $0x18] ss:$2 sm:$0xff]  ;;  %v1021_v40 = vld [vmem:[#allocation3 + $0x19] ss:$2 sm:$0xff] }
 0x19d   : > { %1090 = vrot.lane.b32.xlu0 %v1003_v33, %s1762_s22  ;;  %v1039_v43 = vld [vmem:[#allocation3 + $0x1a] ss:$2 sm:$0xff] }
 0x19f   : > { %1076 = vrot.lane.b32.xlu1 %v1041_v37, %s1761_s19 }
 0x1a1   : > { %1106 = vrot.lane.b32.xlu0 %v1021_v40, %s1763_s23 }
 0x1a3   : > { %1138 = vrot.lane.b32.xlu1 %v2247_v41, %s1764_s26 }
 0x1a7   : > { %1151 = vrot.lane.b32.xlu1 %v1023_v59, %s1765_s27 }
 0x1ab   : > { %1164 = vrot.lane.b32.xlu1 %v1041_v37, %s1766_s28 }
 0x1ae   : > { %v1651_v42 = vpop.f32.mrf.mxu1 }
 0x1af   : > { %v930_v46 = vadd.f32 %v1651_v42, %v2237_v31  ;;  %1122 = vrot.lane.b32.xlu1 %v1039_v43, %s1767_s8 }
 0x1b0   : > { %v924_v47 = vpop.f32.mrf.mxu1 }
 0x1b1   : > { %v956_v48 = vmax.f32 %v930_v46, 0.0  ;;  %v925_v50 = vadd.f32 %v2237_v31, %v924_v47 }
 0x1b3   : > { %996 = vst.msk [vmem:[#allocation3 + $0x61] sm:$0xff] %vm801_vm2, %v956_v48  ;;  %v955_v53 = vmax.f32 %v925_v50, 0.0 }
 0x1b5   : > { %995 = vst.msk [vmem:[#allocation3 + $0x49] sm:$0xff] %vm801_vm2, %v955_v53 }
 0x1ba   : > { %v1027_v57 = vld [vmem:[#allocation3 + $0x61] ss:$2 sm:$0xff]  ;;  %v2276_v58 = vld [vmem:[#allocation3 + $0x60] ss:$2 sm:$0xff] }
 0x1bb   : > { %1062 = vrot.lane.b32.xlu1 %v1027_v57, %s1760_s18  ;;  %1140 = vrot.lane.b32.xlu0 %v2276_v58, %s1764_s26  ;;  %v1045_v60 = vld [vmem:[#allocation3 + $0x62] ss:$2 sm:$0xff] }
 0x1bc   : > { %v1007_v45 = vld [vmem:[#allocation3 + $0x48] ss:$2 sm:$0xff]  ;;  %v1025_v1 = vld [vmem:[#allocation3 + $0x49] ss:$2 sm:$0xff] }
 0x1bd   : > { %v1043_v2 = vld [vmem:[#allocation3 + $0x4a] ss:$2 sm:$0xff] }
 0x1bf   : > { %1078 = vrot.lane.b32.xlu1 %v1045_v60, %s1761_s19  ;;  %1153 = vrot.lane.b32.xlu0 %v1027_v57, %s1765_s27 }
 0x1c3   : > { %1166 = vrot.lane.b32.xlu0 %v1045_v60, %s1766_s28  ;;  %1092 = vrot.lane.b32.xlu1 %v1007_v45, %s1762_s22 }
 0x1c7   : > { %1108 = vrot.lane.b32.xlu0 %v1025_v1, %s1763_s23 }
 0x1cb   : > { %1124 = vrot.lane.b32.xlu0 %v1043_v2, %s1767_s8 }
 0x1ce   : > { %v1654_v3 = vpop.f32.mrf.mxu1 }
 0x1cf   : > { %v940_v4 = vadd.f32 %v1654_v3, %v2237_v31 }
 0x1d0   : > { %v934_v5 = vpop.f32.mrf.mxu1 }
 0x1d1   : > { %v958_v7 = vmax.f32 %v940_v4, 0.0  ;;  %v935_v9 = vadd.f32 %v2237_v31, %v934_v5 }
 0x1d3   : > { %998 = vst.msk [vmem:[#allocation3 + $0x91] sm:$0xff] %vm801_vm2, %v958_v7  ;;  %v957_v8 = vmax.f32 %v935_v9, 0.0 }
 0x1d5   : > { %997 = vst.msk [vmem:[#allocation3 + $0x79] sm:$0xff] %vm801_vm2, %v957_v8 }
 0x1da   : > { %v1031_v6 = vld [vmem:[#allocation3 + $0x91] ss:$2 sm:$0xff]  ;;  %v1049_v17 = vld [vmem:[#allocation3 + $0x92] ss:$2 sm:$0xff] }
 0x1db   : > { %1064 = vrot.lane.b32.xlu0 %v1031_v6, %s1760_s18  ;;  %v1657_v10 = vpop.f32.mrf.mxu1  ;;  %v2308_v20 = vld [vmem:[#allocation3 + $0x90] ss:$2 sm:$0xff] }
 0x1dc   : > { %v950_v11 = vadd.f32 %v1657_v10, %v2237_v31  ;;  %v1011_v13 = vld [vmem:[#allocation3 + $0x78] ss:$2 sm:$0xff]  ;;  %v1029_v19 = vld [vmem:[#allocation3 + $0x79] ss:$2 sm:$0xff] }
 0x1dd   : > { %1094 = vrot.lane.b32.xlu1 %v1011_v13, %s1762_s22  ;;  %v944_v14 = vpop.f32.mrf.mxu1  ;;  %v1047_v22 = vld [vmem:[#allocation3 + $0x7a] ss:$2 sm:$0xff] }
 0x1de   : > { %v960_v15 = vmax.f32 %v950_v11, 0.0  ;;  %v945_v16 = vadd.f32 %v2237_v31, %v944_v14 }
 0x1df   : > { %1080 = vrot.lane.b32.xlu0 %v1049_v17, %s1761_s19 }
 0x1e0   : > { %1000 = vst.msk [vmem:[#allocation3 + $0xc1] sm:$0xff] %vm801_vm2, %v960_v15  ;;  %v959_v18 = vmax.f32 %v945_v16, 0.0 }
 0x1e1   : > { %1110 = vrot.lane.b32.xlu1 %v1029_v19, %s1763_s23 }
 0x1e2   : > { %999 = vst.msk [vmem:[#allocation3 + $0xa9] sm:$0xff] %vm801_vm2, %v959_v18 }
 0x1e3   : > { %1142 = vrot.lane.b32.xlu0 %v2308_v20, %s1764_s26 }
 0x1e5   : > { %1126 = vrot.lane.b32.xlu1 %v1047_v22, %s1767_s8 }
 0x1e7   : > { %1155 = vrot.lane.b32.xlu0 %v1031_v6, %s1765_s27  ;;  %v1017_v0 = vld [vmem:[#allocation3 + $0xc0] ss:$2 sm:$0xff]  ;;  %v1035_v21 = vld [vmem:[#allocation3 + $0xc1] ss:$2 sm:$0xff] }
 0x1e8   : > { %v1053_v25 = vld [vmem:[#allocation3 + $0xc2] ss:$2 sm:$0xff] }
 0x1e9   : > { %1144 = vrot.lane.b32.xlu1 %v1017_v0, %s1764_s26  ;;  %v1015_v12 = vld [vmem:[#allocation3 + $0xa8] ss:$2 sm:$0xff]  ;;  %v1033_v23 = vld [vmem:[#allocation3 + $0xa9] ss:$2 sm:$0xff] }
 0x1ea   : > { %v1051_v24 = vld [vmem:[#allocation3 + $0xaa] ss:$2 sm:$0xff] }
 0x1eb   : > { %1096 = vrot.lane.b32.xlu0 %v1015_v12, %s1762_s22  ;;  %s274_s22 = scalar_lea.vmem %s2494_s7, %s2496_s25 }
 0x1ed   : > { %1157 = vrot.lane.b32.xlu1 %v1035_v21, %s1765_s27 }
 0x1ef   : > { %1112 = vrot.lane.b32.xlu0 %v1033_v23, %s1763_s23 }
 0x1f1   : > { %1128 = vrot.lane.b32.xlu1 %v1051_v24, %s1767_s8 }
 0x1f3   : > { %1168 = vrot.lane.b32.xlu0 %v1049_v17, %s1766_s28 }
 0x1f5   : > { %1170 = vrot.lane.b32.xlu1 %v1053_v25, %s1766_s28 }
 0x20d   : > { %v1061_v27 = vpop.permute.xlu1 %1060 }
 0x20e   : > { %v1177_v53 = vsel %vm801_vm2, %v2247_v41, %v1061_v27  ;;  %v1439_v27 = vld [vmem:[%s2492_s5 + $0xf8] sm:$0xff] }
 0x20f   : > { %v1091_v31 = vpop.permute.xlu0 %1090  ;;  %1607 = vmatprep.subr.mxu0 %v1439_v27 }
 0x210   : > { %v1186_v39 = vsel %vm1185_vm13, %v1181_v35, %v1091_v31  ;;  %v1421_v31 = vld [vmem:[%s2492_s5 + $0x68] sm:$0xff]  ;;  %v1435_v35 = vld [vmem:[%s2492_s5 + $0xd8] sm:$0xff] }
 0x211   : > { %v1077_v49 = vpop.permute.xlu1 %1076 }
 0x212   : > { %v1182_v54 = vsel %vm1180_vm12, %v1177_v53, %v1077_v49  ;;  %v1423_v49 = vld [vmem:[%s2492_s5 + $0x78] sm:$0xff] }
 0x213   : > { %v1107_v38 = vpop.permute.xlu0 %1106  ;;  %1608 = vmatpush3.msra.mxu0 %v1423_v49 }
 0x214   : > { %v1191_v59 = vsel %vm1190_vm14, %v1186_v39, %v1107_v38  ;;  %1609 = vmatprep.subr.mxu0 %v1438_v28  ;;  %v1434_v38 = vld [vmem:[%s2492_s5 + $0xd0] sm:$0xff] }
 0x215   : > { %v1139_v29 = vpop.permute.xlu1 %1138  ;;  %v1418_v39 = vld [vmem:[%s2492_s5 + $0x50] sm:$0xff] }
 0x219   : > { %v1152_v32 = vpop.permute.xlu1 %1151 }
 0x21d   : > { %v1165_v36 = vpop.permute.xlu1 %1164 }
 0x221   : > { %v1123_v33 = vpop.permute.xlu1 %1122 }
 0x222   : > { %v1196_v37 = vsel %vm1195_vm15, %v1191_v59, %v1123_v33  ;;  %v1433_v59 = vld [vmem:[%s2492_s5 + $0xc8] sm:$0xff] }
 0x223   : > { %v1201_v40 = vsel %vm1200_vm0, %v1196_v37, %v1139_v29  ;;  %v1422_v29 = vld [vmem:[%s2492_s5 + $0x70] sm:$0xff]  ;;  %v1417_v33 = vld [vmem:[%s2492_s5 + $0x48] sm:$0xff] }
 0x224   : > { %v1206_v42 = vsel %vm1205_vm1, %v1201_v40, %v1152_v32  ;;  %1610 = vmatpush3.msra.mxu0 %v1422_v29  ;;  %v1436_v32 = vld [vmem:[%s2492_s5 + $0xe0] sm:$0xff] }
 0x225   : > { %v1211_v43 = vsel %vm1210_vm3, %v1206_v42, %v1165_v36  ;;  %1611 = vmatprep.subr.mxu0 %v1437_v30  ;;  %v1419_v36 = vld [vmem:[%s2492_s5 + $0x58] sm:$0xff]  ;;  %v1432_v40 = vld [vmem:[%s2492_s5 + $0xc0] sm:$0xff] }
 0x226   : > { %1676 = vmatprep.mubr.msk.f32.mxu1 %vm1231_vm4, %v1211_v43  ;;  %1612 = vmatpush3.msra.mxu0 %v1421_v31  ;;  %v1416_v42 = vld [vmem:[%s2492_s5 + $0x40] sm:$0xff] }
 0x227   : > { %1613 = vmatprep.subr.mxu0 %v1436_v32  ;;  %v1576_v43 = vld [vmem:[%s2491_s4] ss:$0 sm:$0xff] }
 0x228   : > { %1614 = vmatpush3.msra.mxu0 %v1420_v34 }
 0x229   : > { %1615 = vmatprep.subr.mxu0 %v1435_v35 }
 0x22a   : > { %1616 = vmatpush3.msra.mxu0 %v1419_v36 }
 0x22b   : > { %1617 = vmatprep.subr.mxu0 %v1434_v38 }
 0x22c   : > { %1618 = vmatpush3.msra.mxu0 %v1418_v39 }
 0x22d   : > { %v1063_v44 = vpop.permute.xlu1 %1062  ;;  %v1141_v46 = vpop.permute.xlu0 %1140  ;;  %1619 = vmatprep.subr.mxu0 %v1433_v59 }
 0x22e   : > { %v1178_v7 = vsel %vm801_vm2, %v2276_v58, %v1063_v44  ;;  %1620 = vmatpush3.msra.mxu0 %v1417_v33 }
 0x22f   : > { %1621 = vmatprep.subr.mxu0 %v1432_v40 }
 0x230   : > { %1622 = vmatpush3.msra.mxu0 %v1416_v42 }
 0x231   : > { %v1154_v47 = vpop.permute.xlu0 %1153  ;;  %v1079_v48 = vpop.permute.xlu1 %1078 }
 0x232   : > { %v1183_v8 = vsel %vm1180_vm12, %v1178_v7, %v1079_v48 }
 0x235   : > { %v1167_v50 = vpop.permute.xlu0 %1166  ;;  %v1093_v51 = vpop.permute.xlu1 %1092 }
 0x236   : > { %v1187_v55 = vsel %vm1185_vm13, %v1182_v54, %v1093_v51  ;;  %v1414_v51 = vld [vmem:[%s2492_s5 + $0x30] sm:$0xff]  ;;  %v1429_v54 = vld [vmem:[%s2492_s5 + $0xa8] sm:$0xff] }
 0x239   : > { %v1109_v52 = vpop.permute.xlu0 %1108 }
 0x23a   : > { %v1192_v56 = vsel %vm1190_vm14, %v1187_v55, %v1109_v52 }
 0x23d   : > { %v1125_v57 = vpop.permute.xlu0 %1124 }
 0x23e   : > { %v1197_v61 = vsel %vm1195_vm15, %v1192_v56, %v1125_v57  ;;  %v1413_v56 = vld [vmem:[%s2492_s5 + $0x28] sm:$0xff] }
 0x23f   : > { %v1202_v63 = vsel %vm1200_vm0, %v1197_v61, %v1141_v46  ;;  %v1431_v46 = vld [vmem:[%s2492_s5 + $0xb8] sm:$0xff] }
 0x240   : > { %v1207_v60 = vsel %vm1205_vm1, %v1202_v63, %v1154_v47  ;;  %1623 = vmatprep.subr.mxu0 %v1431_v46  ;;  %v1415_v47 = vld [vmem:[%s2492_s5 + $0x38] sm:$0xff]  ;;  %v1428_v63 = vld [vmem:[%s2492_s5 + $0xa0] sm:$0xff] }
 0x241   : > { %v1212_v62 = vsel %vm1210_vm3, %v1207_v60, %v1167_v50  ;;  %1624 = vmatpush3.msra.mxu0 %v1415_v47  ;;  %v1430_v50 = vld [vmem:[%s2492_s5 + $0xb0] sm:$0xff] }
 0x242   : > { %1677 = vmatmul.mubr.msk.f32.vlgmr.msra.gmra.mxu1 %vm1231_vm4, %v1212_v62  ;;  %1625 = vmatprep.subr.mxu0 %v1430_v50 }
 0x243   : > { %1626 = vmatpush3.msra.mxu0 %v1414_v51 }
 0x244   : > { %1627 = vmatprep.subr.mxu0 %v1429_v54 }
 0x245   : > { %1628 = vmatpush3.msra.mxu0 %v1413_v56 }
 0x246   : > { %1629 = vmatprep.subr.mxu0 %v1428_v63 }
 0x24d   : > { %v1065_v45 = vpop.permute.xlu0 %1064 }
 0x24e   : > { %v1179_v13 = vsel %vm801_vm2, %v2308_v20, %v1065_v45  ;;  %vm1395_vm2 = vcmask 654336  }
 0x24f   : > { %v1095_v1 = vpop.permute.xlu1 %1094 }
 0x250   : > { %v1188_v6 = vsel %vm1185_vm13, %v1183_v8, %v1095_v1  ;;  %v1412_v1 = vld [vmem:[%s2492_s5 + $0x20] sm:$0xff] }
 0x251   : > { %v1081_v41 = vpop.permute.xlu0 %1080  ;;  %1630 = vmatpush3.msra.mxu0 %v1412_v1 }
 0x252   : > { %v1184_v16 = vsel %vm1180_vm12, %v1179_v13, %v1081_v41  ;;  %v1427_v41 = vld [vmem:[%s2492_s5 + $0x98] sm:$0xff] }
 0x253   : > { %v1111_v2 = vpop.permute.xlu1 %1110  ;;  %1631 = vmatprep.subr.mxu0 %v1427_v41  ;;  %v1440_v41 = vld [vmem:[%s2493_s6] sm:$0x1] }
 0x254   : > { %v1193_v11 = vsel %vm1190_vm14, %v1188_v6, %v1111_v2 }
 0x255   : > { %v1143_v3 = vpop.permute.xlu0 %1142 }
 0x257   : > { %v1127_v4 = vpop.permute.xlu1 %1126 }
 0x258   : > { %v1198_v14 = vsel %vm1195_vm15, %v1193_v11, %v1127_v4  ;;  %v1411_v4 = vld [vmem:[%s2492_s5 + $0x18] sm:$0xff] }
 0x259   : > { %v1156_v5 = vpop.permute.xlu0 %1155  ;;  %v1203_v58 = vsel %vm1200_vm0, %v1198_v14, %v1143_v3  ;;  %1632 = vmatpush3.msra.mxu0 %v1411_v4  ;;  %v1425_v14 = vld [vmem:[%s2492_s5 + $0x88] sm:$0xff] }
 0x25a   : > { %v1208_v12 = vsel %vm1205_vm1, %v1203_v58, %v1156_v5  ;;  %v1408_v58 = vld [vmem:[%s2492_s5] sm:$0xff] }
 0x25b   : > { %v1145_v9 = vpop.permute.xlu1 %1144 }
 0x25d   : > { %v1097_v10 = vpop.permute.xlu0 %1096 }
 0x25e   : > { %v1189_v17 = vsel %vm1185_vm13, %v1184_v16, %v1097_v10  ;;  %v1410_v10 = vld [vmem:[%s2492_s5 + $0x10] sm:$0xff] }
 0x25f   : > { %v1158_v15 = vpop.permute.xlu1 %1157 }
 0x261   : > { %v1113_v18 = vpop.permute.xlu0 %1112 }
 0x262   : > { %v1194_v19 = vsel %vm1190_vm14, %v1189_v17, %v1113_v18  ;;  %v1409_v17 = vld [vmem:[%s2492_s5 + $0x8] sm:$0xff]  ;;  %v1424_v18 = vld [vmem:[%s2492_s5 + $0x80] sm:$0xff] }
 0x263   : > { %v1129_v22 = vpop.permute.xlu1 %1128 }
 0x264   : > { %v1199_v0 = vsel %vm1195_vm15, %v1194_v19, %v1129_v22 }
 0x265   : > { %v1204_v21 = vsel %vm1200_vm0, %v1199_v0, %v1145_v9  ;;  %v1169_v20 = vpop.permute.xlu0 %1168  ;;  %v1426_v9 = vld [vmem:[%s2492_s5 + $0x90] sm:$0xff] }
 0x266   : > { %v1213_v23 = vsel %vm1210_vm3, %v1208_v12, %v1169_v20  ;;  %v1209_v24 = vsel %vm1205_vm1, %v1204_v21, %v1158_v15  ;;  %1633 = vmatprep.subr.mxu0 %v1426_v9 }
 0x267   : > { %v1171_v25 = vpop.permute.xlu1 %1170  ;;  %1679 = vmatprep.mubr.msk.f32.mxu1 %vm1231_vm4, %v1213_v23  ;;  %1634 = vmatpush3.msra.mxu0 %v1410_v10 }
 0x268   : > { %v1214_v26 = vsel %vm1210_vm3, %v1209_v24, %v1171_v25  ;;  %1635 = vmatprep.subr.mxu0 %v1425_v14 }
 0x269   : > { %1680 = vmatmul.mubr.msk.f32.gmra.mxu1 %vm1231_vm4, %v1214_v26  ;;  %1636 = vmatpush3.msra.mxu0 %v1409_v17 }
 0x26a   : > { %1637 = vmatprep.subr.mxu0 %v1424_v18 }
 0x26b   : > { %1638 = vmatpush3.msra.mxu0 %v1408_v58 }
 0x302   : > { %v1678_v37 = vpop.f32.mrf.mxu1 }
 0x303   : > { %v1316_v48 = vadd.f32 %v1678_v37, %v1576_v43 }
 0x304   : > { %v1310_v44 = vpop.f32.mrf.mxu1 }
 0x305   : > { %v1311_v52 = vadd.f32 %v1576_v43, %v1310_v44  ;;  %v1330_v57 = vmax.f32 %v1316_v48, 0.0 }
 0x307   : > { %v1329_v60 = vmax.f32 %v1311_v52, 0.0  ;;  %v1350_v5 = vrot.slane %v1330_v57, 1  ;;  %v1354_v22 = vrot.slane %v1330_v57, 2  ;;  %v1358_v25 = vrot.slane %v1330_v57, 3 }
 0x309   : > { %v1338_v8 = vrot.slane %v1329_v60, 2  ;;  %v1334_v19 = vrot.slane %v1329_v60, 1  ;;  %v1342_v20 = vrot.slane %v1329_v60, 3 }
 0x329   : > { %v1681_v53 = vpop.f32.mrf.mxu1 }
 0x32a   : > { %v1326_v55 = vadd.f32 %v1681_v53, %v1576_v43 }
 0x32b   : > { %v1320_v61 = vpop.f32.mrf.mxu1 }
 0x32c   : > { %v1332_v62 = vmax.f32 %v1326_v55, 0.0  ;;  %v1321_v45 = vadd.f32 %v1576_v43, %v1320_v61 }
 0x32e   : > { %v1331_v2 = vmax.f32 %v1321_v45, 0.0  ;;  %v1709_v3 = vpack.i.bf16 %v1330_v57, %v1332_v62  ;;  %v1379_v7 = vrot.slane %v1332_v62, 1  ;;  %v1383_v15 = vrot.slane %v1332_v62, 2 }
 0x32f   : > { %v1387_v23 = vrot.slane %v1332_v62, 3 }
 0x330   : > { %v1367_v6 = vrot.slane %v1331_v2, 2  ;;  %1710 = vrot.lane.b32.xlu1 %v1709_v3, %s1766_s28  ;;  %v1363_v11 = vrot.slane %v1331_v2, 1  ;;  %v1714_v13 = vpack.i.bf16 %v1350_v5, %v1379_v7  ;;  %v1371_v0 = vrot.slane %v1331_v2, 3 }
 0x331   : > { %v1734_v21 = vpack.i.bf16 %v1354_v22, %v1383_v15  ;;  %v1739_v26 = vpack.i.bf16 %v1358_v25, %v1387_v23 }
 0x332   : > { %v1724_v16 = vpack.i.bf16 %v1338_v8, %v1367_v6  ;;  %1715 = vrot.lane.b32.xlu0 %v1714_v13, %s1768_s9  ;;  %v1719_v12 = vpack.i.bf16 %v1334_v19, %v1363_v11  ;;  %v1729_v24 = vpack.i.bf16 %v1342_v20, %v1371_v0 }
 0x334   : > { %1725 = vrot.lane.b32.xlu1 %v1724_v16, %s1763_s23 }
 0x336   : > { %1720 = vrot.lane.b32.xlu0 %v1719_v12, %s1761_s19 }
 0x338   : > { %1735 = vrot.lane.b32.xlu1 %v1734_v21, %s1769_s10 }
 0x33a   : > { %1730 = vrot.lane.b32.xlu0 %v1729_v24, %s1764_s26 }
 0x33e   : > { %1740 = vrot.lane.b32.xlu0 %v1739_v26, %s1770_s11 }
 0x3a2   : > { %v1711_v27 = vpop.permute.xlu1 %1710 }
 0x3a3   : > { %v1713_v37 = vunpack.i.h.bf16 %v1711_v27  ;;  %v1712_v40 = vunpack.i.l.bf16 %v1711_v27 }
 0x3a4   : > { %v1716_v49 = vpop.permute.xlu0 %1715 }
 0x3a5   : > { %v1718_v44 = vunpack.i.h.bf16 %v1716_v49  ;;  %v1717_v46 = vunpack.i.l.bf16 %v1716_v49 }
 0x3a6   : > { %v1726_v28 = vpop.permute.xlu1 %1725 }
 0x3a7   : > { %v1728_v35 = vunpack.i.h.bf16 %v1726_v28  ;;  %v1727_v36 = vunpack.i.l.bf16 %v1726_v28 }
 0x3a8   : > { %v1721_v29 = vpop.permute.xlu0 %1720 }
 0x3a9   : > { %v1723_v30 = vunpack.i.h.bf16 %v1721_v29  ;;  %v1722_v31 = vunpack.i.l.bf16 %v1721_v29 }
 0x3aa   : > { %v1736_v39 = vpop.permute.xlu1 %1735 }
 0x3ab   : > { %v1391_v32 = vsel %vm1180_vm12, %v1329_v60, %v1723_v30  ;;  %v1401_v34 = vsel %vm1180_vm12, %v1331_v2, %v1722_v31  ;;  %v1738_v50 = vunpack.i.h.bf16 %v1736_v39  ;;  %v1737_v51 = vunpack.i.l.bf16 %v1736_v39 }
 0x3ac   : > { %v1731_v38 = vpop.permute.xlu0 %1730  ;;  %v1392_v42 = vsel %vm1190_vm14, %v1391_v32, %v1728_v35  ;;  %v1402_v43 = vsel %vm1190_vm14, %v1401_v34, %v1727_v36 }
 0x3ad   : > { %v1733_v59 = vunpack.i.h.bf16 %v1731_v38  ;;  %v1732_v33 = vunpack.i.l.bf16 %v1731_v38 }
 0x3af   : > { %v1393_v47 = vsel %vm1200_vm0, %v1392_v42, %v1733_v59  ;;  %v1403_v48 = vsel %vm1200_vm0, %v1402_v43, %v1732_v33 }
 0x3b0   : > { %v1741_v52 = vpop.permute.xlu0 %1740  ;;  %v1404_v53 = vsel %vm1210_vm3, %v1403_v48, %v1712_v40  ;;  %v1394_v54 = vsel %vm1210_vm3, %v1393_v47, %v1713_v37 }
 0x3b1   : > { %v1743_v55 = vunpack.i.h.bf16 %v1741_v52  ;;  %v1742_v56 = vunpack.i.l.bf16 %v1741_v52  ;;  %v1405_v57 = vsel %vm1395_vm2, %v1404_v53, %v1717_v46  ;;  %v1396_v61 = vsel %vm1395_vm2, %v1394_v54, %v1718_v44 }
 0x3b2   : > { %v1406_v63 = vsel %vm1397_vm5, %v1405_v57, %v1737_v51  ;;  %v1398_v60 = vsel %vm1397_vm5, %v1396_v61, %v1738_v50 }
 0x3b3   : > { %v1407_v62 = vsel %vm1399_vm6, %v1406_v63, %v1742_v56  ;;  %v1400_v45 = vsel %vm1399_vm6, %v1398_v60, %v1743_v55 }
 0x3b4   : > { %1505 = vmatprep.mubr.f32.mxu0 %v1407_v62 }
 0x3b5   : > { %1506 = vmatmul.mubr.f32.vlgmr.msra.gmra.mxu0 %v1400_v45 }
 0x475   : > { %v1639_v1 = vpop.f32.mrf.mxu0 }
 0x477   : > { %v1640_v2 = vpop.f32.mrf.mxu0 }
 0x478   : > { %v1641_v3 = vadd.f32 %v1640_v2, %v1639_v1 }
 0x47a   : > { %v1508_v4 = vadd.f32 %v1641_v3, %v1440_v41 }
 0x47c   : > { %1511 = vst [vmem:[%s274_s22] sm:$0x1] %v1508_v4 }
 0x47d PF: > { %s17_s24 = sadd.s32 1, %s1750_s24  }
 0x47e   : > { %p14_p4 = scmp.ge.s32.totalorder %s17_s24, 4  }
 0x480   :  { %16 = sbr.rel (!%p14_p4) target bundleno = 1 (0x1), region = 156 }

</bundles_post_ra>
